<compile_context>
chip_gen: v6e
topology: v6e:2x2x1
jax: 0.10.0
libtpu: 0.0.40
codegen_flags: <defaults>
</compile_context>

<pallas_src>
import functools

import jax
import jax.numpy as jnp
from jax.experimental import pallas as pl
from jax.experimental.pallas import tpu as pltpu


def _round_up(n, m):
    return (n + m - 1) // m * m


def gru_fc_kernel(x_ref, wih_ref, whh_ref, bx_ref, bhn_ref, wfc_ref, bfc_ref,
                  out_ref, gx_ref, h_ref, *, T, Tc, Bp, Hp, unroll, mask_tail):
    """One time-chunk of the GRU recurrence (+ fc on the last chunk).

    x_ref  : (Tc*Bp, Dp)  bf16  time-major, batch/lane padded input chunk
    wih_ref: (Dp, 3*Hp)   bf16  input weights, gate-major lane-aligned stripes
    whh_ref: (Hp, 3*Hp)   bf16  recurrent weights, same layout
    bx_ref : (1, 3*Hp)    f32   [b_ih_r+b_hh_r, b_ih_z+b_hh_z, b_ih_n]
    bhn_ref: (1, Hp)      f32   b_hh_n (kept separate: gated by r)
    wfc_ref: (Hp, Op)     bf16  fc weight (transposed), bfc_ref: (1, Op) f32
    out_ref: (Bp, Op)     f32   fc(h_T), written only at the last chunk
    gx_ref : (Tc*Bp, 3*Hp) bf16 scratch for this chunk's input projection
    h_ref  : (Bp, Hp)      f32  hidden state, persists across grid steps
    """
    c = pl.program_id(0)

    @pl.when(c == 0)
    def _init():
        h_ref[...] = jnp.zeros_like(h_ref)

    # ---- Input projection for this chunk: one bf16 MXU GEMM, f32 accumulate.
    gx_ref[...] = (
        jnp.dot(x_ref[...], wih_ref[...], preferred_element_type=jnp.float32)
        + bx_ref[...]).astype(gx_ref.dtype)

    # Hoist the n-gate hidden-bias broadcast (JAX does not CSE broadcast_in_dim
    # inside the unrolled loop body).
    b_hn = jnp.broadcast_to(bhn_ref[...], (Bp, Hp))

    def step(t, h):
        row = pl.multiple_of(t * Bp, 8)
        g = gx_ref[pl.ds(row, Bp), :].astype(jnp.float32)           # (Bp, 3Hp)
        # Recurrent matmul: bf16 operands, f32 accumulate.  whh_ref is read
        # inside the loop so it streams from VMEM (no vreg-resident live range
        # across the unrolled loop -> no spills).
        gh = jnp.dot(h.astype(jnp.bfloat16), whh_ref[...],
                     preferred_element_type=jnp.float32)             # (Bp, 3Hp)
        # Gate math in f32 (each gate is a full 128-lane stripe -> pure VPU).
        r = jax.nn.sigmoid(g[:, 0 * Hp:1 * Hp] + gh[:, 0 * Hp:1 * Hp])
        z = jax.nn.sigmoid(g[:, 1 * Hp:2 * Hp] + gh[:, 1 * Hp:2 * Hp])
        n = jnp.tanh(g[:, 2 * Hp:3 * Hp] + r * (gh[:, 2 * Hp:3 * Hp] + b_hn))
        h_new = n + z * (h - n)          # == (1 - z) * n + z * h
        if mask_tail:                    # static: only emitted if T % Tc != 0
            h_new = jnp.where(c * Tc + t < T, h_new, h)
        return h_new

    h = jax.lax.fori_loop(0, Tc, step, h_ref[...], unroll=unroll)
    h_ref[...] = h

    @pl.when(c == pl.num_programs(0) - 1)
    def _finalize():
        out_ref[...] = (
            jnp.dot(h.astype(jnp.bfloat16), wfc_ref[...],
                    preferred_element_type=jnp.float32)
            + bfc_ref[...]).astype(out_ref.dtype)


def audio_only_forward(x, params, *, time_chunk=256, unroll=8):
    """x: (batch, time, input_dim). Returns fc(h_T): (batch, output_dim)."""
    B, T, D = x.shape
    w_ih, w_hh, b_ih, b_hh, w_fc, b_fc = params
    H = w_hh.shape[1]          # w_hh is (3H, H)
    O = w_fc.shape[1]

    Bp = _round_up(B, 8)       # sublane alignment
    Dp = _round_up(D, 128)     # lane alignment
    Hp = _round_up(H, 128)
    Op = _round_up(O, 128)

    Tc = min(T, time_chunk)    # time-chunk length (residency per grid step)
    nc = -(-T // Tc)           # number of chunks
    Tpad = nc * Tc

    # Reproduce PyTorch's x.view(time, batch, dim): a raw reshape of contiguous
    # data (intentionally NOT a transpose), then pad + flatten in bf16 so the
    # per-chunk input projection is a single lane-dense MXU operand and the
    # wrapper-side HBM traffic is halved.
    x_tm = jnp.reshape(x, (T, B, D))
    x_p = jnp.pad(x_tm, ((0, Tpad - T), (0, Bp - B), (0, Dp - D)))
    x_p = x_p.reshape(Tpad * Bp, Dp).astype(jnp.bfloat16)

    def pad2(a, rows, cols):
        return jnp.pad(a, ((0, rows - a.shape[0]), (0, cols - a.shape[1])))

    def pad1(v, n):
        return jnp.pad(v, (0, n - v.shape[0]))

    # Gate-major, lane-aligned weight layouts (PyTorch gate order r, z, n).
    w_ih_g = w_ih.reshape(3, H, D)
    w_hh_g = w_hh.reshape(3, H, H)
    b_ih_g = b_ih.reshape(3, H)
    b_hh_g = b_hh.reshape(3, H)

    wih_p = jnp.concatenate([pad2(w_ih_g[g].T, Dp, Hp) for g in range(3)],
                            axis=1).astype(jnp.bfloat16)           # (Dp, 3Hp)
    whh_p = jnp.concatenate([pad2(w_hh_g[g].T, Hp, Hp) for g in range(3)],
                            axis=1).astype(jnp.bfloat16)           # (Hp, 3Hp)

    # Pre-fold b_ih + b_hh for r and z; keep the n-gate hidden bias separate
    # (it is gated by r).  Biases stay f32 (added to the f32 accumulators).
    bx_p = jnp.concatenate([pad1(b_ih_g[0] + b_hh_g[0], Hp),
                            pad1(b_ih_g[1] + b_hh_g[1], Hp),
                            pad1(b_ih_g[2], Hp)]).reshape(1, 3 * Hp)
    bx_p = bx_p.astype(jnp.float32)
    bhn_p = pad1(b_hh_g[2], Hp).reshape(1, Hp).astype(jnp.float32)

    wfc_p = pad2(w_fc, Hp, Op).astype(jnp.bfloat16)                # (Hp, Op)
    bfc_p = pad1(b_fc, Op).reshape(1, Op).astype(jnp.float32)

    # VMEM budget: double-buffered inputs + scratch, with headroom.
    vmem_need = (
        2 * (Tc * Bp * Dp * 2)                               # x chunk, bf16
        + 2 * (Dp * 3 * Hp + Hp * 3 * Hp + Hp * Op) * 2      # weights, bf16
        + 2 * (3 * Hp + Hp + Op) * 4                         # biases, f32
        + 2 * (Bp * Op * 4)                                  # out, f32
        + Tc * Bp * 3 * Hp * 2                               # gx scratch, bf16
        + Bp * Hp * 4)                                       # h scratch, f32
    vmem_limit = int(max(32 << 20, min(vmem_need + (8 << 20), 112 << 20)))

    cost = pl.CostEstimate(
        flops=(2 * Tpad * Bp * Dp * 3 * Hp        # input projection
               + 2 * Tpad * Bp * Hp * 3 * Hp      # recurrent matmuls
               + 2 * Bp * Hp * Op),               # fc
        transcendentals=3 * Tpad * Bp * Hp,       # 2 sigmoid + 1 tanh / step
        bytes_accessed=(x_p.size * 2
                        + (Dp * 3 * Hp + Hp * 3 * Hp + Hp * Op) * 2
                        + (3 * Hp + Hp + Op) * 4
                        + Bp * Op * 4),
    )

    kernel = functools.partial(
        gru_fc_kernel, T=T, Tc=Tc, Bp=Bp, Hp=Hp,
        unroll=min(unroll, Tc), mask_tail=(Tpad != T))

    out_p = pl.pallas_call(
        kernel,
        out_shape=jax.ShapeDtypeStruct((Bp, Op), jnp.float32),
        grid=(nc,),
        in_specs=[
            pl.BlockSpec((Tc * Bp, Dp), lambda c: (c, 0)),   # x: streamed
            pl.BlockSpec((Dp, 3 * Hp), lambda c: (0, 0)),    # w_ih: resident
            pl.BlockSpec((Hp, 3 * Hp), lambda c: (0, 0)),    # w_hh: resident
            pl.BlockSpec((1, 3 * Hp), lambda c: (0, 0)),     # bx
            pl.BlockSpec((1, Hp), lambda c: (0, 0)),         # b_hh_n
            pl.BlockSpec((Hp, Op), lambda c: (0, 0)),        # w_fc
            pl.BlockSpec((1, Op), lambda c: (0, 0)),         # b_fc
        ],
        out_specs=pl.BlockSpec((Bp, Op), lambda c: (0, 0)),
        scratch_shapes=[
            pltpu.VMEM((Tc * Bp, 3 * Hp), jnp.bfloat16),     # gx chunk
            pltpu.VMEM((Bp, Hp), jnp.float32),               # hidden state h
        ],
        compiler_params=pltpu.CompilerParams(
            dimension_semantics=("arbitrary",),
            vmem_limit_bytes=vmem_limit),
        cost_estimate=cost,
    )(x_p, wih_p, whh_p, bx_p, bhn_p, wfc_p, bfc_p)

    return out_p[:B, :O]


def reference_forward(x, params):
    """Pure-JAX f32 reference of the same forward pass (for validation)."""
    B, T, D = x.shape
    w_ih, w_hh, b_ih, b_hh, w_fc, b_fc = params
    H = w_hh.shape[1]
    x_tm = jnp.reshape(x, (T, B, D))
    h = jnp.zeros((B, H), jnp.float32)
    for t in range(T):
        gx = x_tm[t] @ w_ih.T + b_ih
        gh = h @ w_hh.T + b_hh
        r = jax.nn.sigmoid(gx[:, :H] + gh[:, :H])
        z = jax.nn.sigmoid(gx[:, H:2 * H] + gh[:, H:2 * H])
        n = jnp.tanh(gx[:, 2 * H:] + r * gh[:, 2 * H:])
        h = (1.0 - z) * n + z * h
    return h @ w_fc + b_fc


def init_params(key, input_dim, hidden_dim, output_dim):
    """Deterministic synthetic init (same shapes as nn.GRU / nn.Linear)."""
    ks = jax.random.split(key, 6)
    s = 1.0 / jnp.sqrt(hidden_dim)
    w_ih = jax.random.uniform(ks[0], (3 * hidden_dim, input_dim),
                              jnp.float32, -s, s)
    w_hh = jax.random.uniform(ks[1], (3 * hidden_dim, hidden_dim),
                              jnp.float32, -s, s)
    b_ih = jax.random.uniform(ks[2], (3 * hidden_dim,), jnp.float32, -s, s)
    b_hh = jax.random.uniform(ks[3], (3 * hidden_dim,), jnp.float32, -s, s)
    w_fc = jax.random.uniform(ks[4], (hidden_dim, output_dim),
                              jnp.float32, -s, s)   # stored as (H, O) = W.T
    b_fc = jax.random.uniform(ks[5], (output_dim,), jnp.float32, -s, s)
    return (w_ih, w_hh, b_ih, b_hh, w_fc, b_fc)


if __name__ == "__main__":
    # Small shapes consistent with (batch, time_step, dim) input.
    batch, time_steps = 2, 8
    input_dim, hidden_dim, output_dim = 32, 32, 16

    key = jax.random.PRNGKey(0)
    k_x, k_p = jax.random.split(key)
    x = jax.random.normal(k_x, (batch, time_steps, input_dim), jnp.float32)
    params = init_params(k_p, input_dim, hidden_dim, output_dim)

    out = jax.block_until_ready(audio_only_forward(x, params))
    ref = reference_forward(x, params)

    assert out.shape == (batch, output_dim)
    # Tolerance covers the bf16 MXU operands / bf16 gx scratch vs the f32
    # reference (f32 accumulation keeps the error small).
    assert jnp.allclose(out, ref, atol=2e-2, rtol=2e-2), "mismatch vs reference"
    print("KERNEL_OK")
</pallas_src>

<mosaic_0001>
module attributes {stable_mosaic.version = 11 : i64} {
  func.func @gru_fc_kernel(%arg0: i32, %arg1: memref<64x128xbf16, #tpu.memory_space<vmem>>, %arg2: memref<128x384xbf16, #tpu.memory_space<vmem>>, %arg3: memref<128x384xbf16, #tpu.memory_space<vmem>>, %arg4: memref<1x384xf32, #tpu.memory_space<vmem>>, %arg5: memref<1x128xf32, #tpu.memory_space<vmem>>, %arg6: memref<128x128xbf16, #tpu.memory_space<vmem>>, %arg7: memref<1x128xf32, #tpu.memory_space<vmem>>, %arg8: memref<8x128xf32, #tpu.memory_space<vmem>>, %arg9: memref<64x384xbf16, #tpu.memory_space<vmem>>, %arg10: memref<8x128xf32, #tpu.memory_space<vmem>>) attributes {dimension_semantics = [#tpu.dimension_semantics<arbitrary>], iteration_bounds = array<i64: 1>, scalar_prefetch = 0 : i64, scratch_operands = 2 : i64, tpu.core_type = #tpu.core_type<tc>, window_params = [{transform_indices = @transform_0, window_bounds = array<i64: 64, 128>}, {pipeline_mode = #tpu.pipeline_mode<synchronous>, transform_indices = @transform_1, window_bounds = array<i64: 128, 384>}, {pipeline_mode = #tpu.pipeline_mode<synchronous>, transform_indices = @transform_2, window_bounds = array<i64: 128, 384>}, {pipeline_mode = #tpu.pipeline_mode<synchronous>, transform_indices = @transform_3, window_bounds = array<i64: 1, 384>}, {pipeline_mode = #tpu.pipeline_mode<synchronous>, transform_indices = @transform_4, window_bounds = array<i64: 1, 128>}, {pipeline_mode = #tpu.pipeline_mode<synchronous>, transform_indices = @transform_5, window_bounds = array<i64: 128, 128>}, {pipeline_mode = #tpu.pipeline_mode<synchronous>, transform_indices = @transform_6, window_bounds = array<i64: 1, 128>}, {pipeline_mode = #tpu.pipeline_mode<synchronous>, transform_indices = @transform_7, window_bounds = array<i64: 8, 128>}]} {
    %c0_i32 = arith.constant 0 : i32
    %0 = arith.cmpi eq, %arg0, %c0_i32 : i32
    %1 = arith.extui %0 : i1 to i32
    %c0_i32_0 = arith.constant 0 : i32
    %2 = arith.cmpi ne, %1, %c0_i32_0 : i32
    scf.if %2 {
      %cst_73 = arith.constant 0.000000e+00 : f32
      %283 = vector.broadcast %cst_73 : f32 to vector<8x128xf32>
      %c0_74 = arith.constant 0 : index
      %c0_75 = arith.constant 0 : index
      %284 = vector.load %arg10[%c0_74, %c0_75] : memref<8x128xf32, #tpu.memory_space<vmem>>, vector<8x128xf32>
      tpu.vector_store %arg10[%c0_74, %c0_75], %283 {strides = array<i32>} : memref<8x128xf32, #tpu.memory_space<vmem>>, vector<8x128xf32>,
    } else {
    }
    %c0 = arith.constant 0 : index
    %c0_1 = arith.constant 0 : index
    %3 = vector.load %arg1[%c0, %c0_1] : memref<64x128xbf16, #tpu.memory_space<vmem>>, vector<64x128xbf16>
    %c0_2 = arith.constant 0 : index
    %c0_3 = arith.constant 0 : index
    %4 = vector.load %arg2[%c0_2, %c0_3] : memref<128x384xbf16, #tpu.memory_space<vmem>>, vector<128x384xbf16>
    %cst = arith.constant dense<0.000000e+00> : vector<64x384xf32>
    %5 = tpu.matmul %3, %4, %cst {dimension_numbers = #tpu.dot_dimension_numbers<[1], [0], [0], [1], [0, 0, 1, 1], [], []>} : vector<64x128xbf16>, vector<128x384xbf16>, vector<64x384xf32> -> vector<64x384xf32>
    %c0_4 = arith.constant 0 : index
    %c0_5 = arith.constant 0 : index
    %6 = vector.load %arg4[%c0_4, %c0_5] : memref<1x384xf32, #tpu.memory_space<vmem>>, vector<1x384xf32>
    %7 = vector.broadcast %6 : vector<1x384xf32> to vector<64x384xf32>
    %8 = arith.addf %5, %7 : vector<64x384xf32>
    %9 = arith.truncf %8 : vector<64x384xf32> to vector<64x384xbf16>
    %c0_6 = arith.constant 0 : index
    %c0_7 = arith.constant 0 : index
    %10 = vector.load %arg9[%c0_6, %c0_7] : memref<64x384xbf16, #tpu.memory_space<vmem>>, vector<64x384xbf16>
    tpu.vector_store %arg9[%c0_6, %c0_7], %9 {strides = array<i32>} : memref<64x384xbf16, #tpu.memory_space<vmem>>, vector<64x384xbf16>,
    %c0_8 = arith.constant 0 : index
    %c0_9 = arith.constant 0 : index
    %11 = vector.load %arg5[%c0_8, %c0_9] : memref<1x128xf32, #tpu.memory_space<vmem>>, vector<1x128xf32>
    %12 = vector.shape_cast %11 : vector<1x128xf32> to vector<1x128xf32>
    %13 = vector.broadcast %12 : vector<1x128xf32> to vector<8x128xf32>
    %c0_10 = arith.constant 0 : index
    %c0_11 = arith.constant 0 : index
    %14 = vector.load %arg10[%c0_10, %c0_11] : memref<8x128xf32, #tpu.memory_space<vmem>>, vector<8x128xf32>
    %c0_i32_12 = arith.constant 0 : i32
    %c8_i32 = arith.constant 8 : i32
    %15 = arith.muli %c0_i32_12, %c8_i32 : i32
    %16 = tpu.assume_multiple %15, 8 : i32
    %17 = arith.index_cast %16 : i32 to index
    %c0_13 = arith.constant 0 : index
    %18 = vector.load %arg9[%17, %c0_13] : memref<64x384xbf16, #tpu.memory_space<vmem>>, vector<8x384xbf16>
    %19 = arith.extf %18 : vector<8x384xbf16> to vector<8x384xf32>
    %20 = arith.truncf %14 : vector<8x128xf32> to vector<8x128xbf16>
    %c0_14 = arith.constant 0 : index
    %c0_15 = arith.constant 0 : index
    %21 = vector.load %arg3[%c0_14, %c0_15] : memref<128x384xbf16, #tpu.memory_space<vmem>>, vector<128x384xbf16>
    %cst_16 = arith.constant dense<0.000000e+00> : vector<8x384xf32>
    %22 = tpu.matmul %20, %21, %cst_16 {dimension_numbers = #tpu.dot_dimension_numbers<[1], [0], [0], [1], [0, 0, 1, 1], [], []>} : vector<8x128xbf16>, vector<128x384xbf16>, vector<8x384xf32> -> vector<8x384xf32>
    %23 = vector.extract_strided_slice %19 {offsets = [0, 0], sizes = [8, 128], strides = [1, 1]} : vector<8x384xf32> to vector<8x128xf32>
    %24 = vector.extract_strided_slice %22 {offsets = [0, 0], sizes = [8, 128], strides = [1, 1]} : vector<8x384xf32> to vector<8x128xf32>
    %25 = arith.addf %23, %24 : vector<8x128xf32>
    %26 = arith.negf %25 : vector<8x128xf32>
    %27 = math.exp %26 : vector<8x128xf32>
    %cst_17 = arith.constant 1.000000e+00 : f32
    %28 = vector.broadcast %cst_17 : f32 to vector<8x128xf32>
    %29 = arith.addf %28, %27 : vector<8x128xf32>
    %30 = arith.divf %28, %29 : vector<8x128xf32>
    %31 = vector.extract_strided_slice %19 {offsets = [0, 128], sizes = [8, 128], strides = [1, 1]} : vector<8x384xf32> to vector<8x128xf32>
    %32 = vector.extract_strided_slice %22 {offsets = [0, 128], sizes = [8, 128], strides = [1, 1]} : vector<8x384xf32> to vector<8x128xf32>
    %33 = arith.addf %31, %32 : vector<8x128xf32>
    %34 = arith.negf %33 : vector<8x128xf32>
    %35 = math.exp %34 : vector<8x128xf32>
    %cst_18 = arith.constant 1.000000e+00 : f32
    %36 = vector.broadcast %cst_18 : f32 to vector<8x128xf32>
    %37 = arith.addf %36, %35 : vector<8x128xf32>
    %38 = arith.divf %36, %37 : vector<8x128xf32>
    %39 = vector.extract_strided_slice %19 {offsets = [0, 256], sizes = [8, 128], strides = [1, 1]} : vector<8x384xf32> to vector<8x128xf32>
    %40 = vector.extract_strided_slice %22 {offsets = [0, 256], sizes = [8, 128], strides = [1, 1]} : vector<8x384xf32> to vector<8x128xf32>
    %41 = arith.addf %40, %13 : vector<8x128xf32>
    %42 = arith.mulf %30, %41 : vector<8x128xf32>
    %43 = arith.addf %39, %42 : vector<8x128xf32>
    %44 = math.tanh %43 : vector<8x128xf32>
    %45 = arith.subf %14, %44 : vector<8x128xf32>
    %46 = arith.mulf %38, %45 : vector<8x128xf32>
    %47 = arith.addf %44, %46 : vector<8x128xf32>
    %c1_i32 = arith.constant 1 : i32
    %c8_i32_19 = arith.constant 8 : i32
    %48 = arith.muli %c1_i32, %c8_i32_19 : i32
    %49 = tpu.assume_multiple %48, 8 : i32
    %50 = arith.index_cast %49 : i32 to index
    %c0_20 = arith.constant 0 : index
    %51 = vector.load %arg9[%50, %c0_20] : memref<64x384xbf16, #tpu.memory_space<vmem>>, vector<8x384xbf16>
    %52 = arith.extf %51 : vector<8x384xbf16> to vector<8x384xf32>
    %53 = arith.truncf %47 : vector<8x128xf32> to vector<8x128xbf16>
    %c0_21 = arith.constant 0 : index
    %c0_22 = arith.constant 0 : index
    %54 = vector.load %arg3[%c0_21, %c0_22] : memref<128x384xbf16, #tpu.memory_space<vmem>>, vector<128x384xbf16>
    %cst_23 = arith.constant dense<0.000000e+00> : vector<8x384xf32>
    %55 = tpu.matmul %53, %54, %cst_23 {dimension_numbers = #tpu.dot_dimension_numbers<[1], [0], [0], [1], [0, 0, 1, 1], [], []>} : vector<8x128xbf16>, vector<128x384xbf16>, vector<8x384xf32> -> vector<8x384xf32>
    %56 = vector.extract_strided_slice %52 {offsets = [0, 0], sizes = [8, 128], strides = [1, 1]} : vector<8x384xf32> to vector<8x128xf32>
    %57 = vector.extract_strided_slice %55 {offsets = [0, 0], sizes = [8, 128], strides = [1, 1]} : vector<8x384xf32> to vector<8x128xf32>
    %58 = arith.addf %56, %57 : vector<8x128xf32>
    %59 = arith.negf %58 : vector<8x128xf32>
    %60 = math.exp %59 : vector<8x128xf32>
    %cst_24 = arith.constant 1.000000e+00 : f32
    %61 = vector.broadcast %cst_24 : f32 to vector<8x128xf32>
    %62 = arith.addf %61, %60 : vector<8x128xf32>
    %63 = arith.divf %61, %62 : vector<8x128xf32>
    %64 = vector.extract_strided_slice %52 {offsets = [0, 128], sizes = [8, 128], strides = [1, 1]} : vector<8x384xf32> to vector<8x128xf32>
    %65 = vector.extract_strided_slice %55 {offsets = [0, 128], sizes = [8, 128], strides = [1, 1]} : vector<8x384xf32> to vector<8x128xf32>
    %66 = arith.addf %64, %65 : vector<8x128xf32>
    %67 = arith.negf %66 : vector<8x128xf32>
    %68 = math.exp %67 : vector<8x128xf32>
    %cst_25 = arith.constant 1.000000e+00 : f32
    %69 = vector.broadcast %cst_25 : f32 to vector<8x128xf32>
    %70 = arith.addf %69, %68 : vector<8x128xf32>
    %71 = arith.divf %69, %70 : vector<8x128xf32>
    %72 = vector.extract_strided_slice %52 {offsets = [0, 256], sizes = [8, 128], strides = [1, 1]} : vector<8x384xf32> to vector<8x128xf32>
    %73 = vector.extract_strided_slice %55 {offsets = [0, 256], sizes = [8, 128], strides = [1, 1]} : vector<8x384xf32> to vector<8x128xf32>
    %74 = arith.addf %73, %13 : vector<8x128xf32>
    %75 = arith.mulf %63, %74 : vector<8x128xf32>
    %76 = arith.addf %72, %75 : vector<8x128xf32>
    %77 = math.tanh %76 : vector<8x128xf32>
    %78 = arith.subf %47, %77 : vector<8x128xf32>
    %79 = arith.mulf %71, %78 : vector<8x128xf32>
    %80 = arith.addf %77, %79 : vector<8x128xf32>
    %c2_i32 = arith.constant 2 : i32
    %c8_i32_26 = arith.constant 8 : i32
    %81 = arith.muli %c2_i32, %c8_i32_26 : i32
    %82 = tpu.assume_multiple %81, 8 : i32
    %83 = arith.index_cast %82 : i32 to index
    %c0_27 = arith.constant 0 : index
    %84 = vector.load %arg9[%83, %c0_27] : memref<64x384xbf16, #tpu.memory_space<vmem>>, vector<8x384xbf16>
    %85 = arith.extf %84 : vector<8x384xbf16> to vector<8x384xf32>
    %86 = arith.truncf %80 : vector<8x128xf32> to vector<8x128xbf16>
    %c0_28 = arith.constant 0 : index
    %c0_29 = arith.constant 0 : index
    %87 = vector.load %arg3[%c0_28, %c0_29] : memref<128x384xbf16, #tpu.memory_space<vmem>>, vector<128x384xbf16>
    %cst_30 = arith.constant dense<0.000000e+00> : vector<8x384xf32>
    %88 = tpu.matmul %86, %87, %cst_30 {dimension_numbers = #tpu.dot_dimension_numbers<[1], [0], [0], [1], [0, 0, 1, 1], [], []>} : vector<8x128xbf16>, vector<128x384xbf16>, vector<8x384xf32> -> vector<8x384xf32>
    %89 = vector.extract_strided_slice %85 {offsets = [0, 0], sizes = [8, 128], strides = [1, 1]} : vector<8x384xf32> to vector<8x128xf32>
    %90 = vector.extract_strided_slice %88 {offsets = [0, 0], sizes = [8, 128], strides = [1, 1]} : vector<8x384xf32> to vector<8x128xf32>
    %91 = arith.addf %89, %90 : vector<8x128xf32>
    %92 = arith.negf %91 : vector<8x128xf32>
    %93 = math.exp %92 : vector<8x128xf32>
    %cst_31 = arith.constant 1.000000e+00 : f32
    %94 = vector.broadcast %cst_31 : f32 to vector<8x128xf32>
    %95 = arith.addf %94, %93 : vector<8x128xf32>
    %96 = arith.divf %94, %95 : vector<8x128xf32>
    %97 = vector.extract_strided_slice %85 {offsets = [0, 128], sizes = [8, 128], strides = [1, 1]} : vector<8x384xf32> to vector<8x128xf32>
    %98 = vector.extract_strided_slice %88 {offsets = [0, 128], sizes = [8, 128], strides = [1, 1]} : vector<8x384xf32> to vector<8x128xf32>
    %99 = arith.addf %97, %98 : vector<8x128xf32>
    %100 = arith.negf %99 : vector<8x128xf32>
    %101 = math.exp %100 : vector<8x128xf32>
    %cst_32 = arith.constant 1.000000e+00 : f32
    %102 = vector.broadcast %cst_32 : f32 to vector<8x128xf32>
    %103 = arith.addf %102, %101 : vector<8x128xf32>
    %104 = arith.divf %102, %103 : vector<8x128xf32>
    %105 = vector.extract_strided_slice %85 {offsets = [0, 256], sizes = [8, 128], strides = [1, 1]} : vector<8x384xf32> to vector<8x128xf32>
    %106 = vector.extract_strided_slice %88 {offsets = [0, 256], sizes = [8, 128], strides = [1, 1]} : vector<8x384xf32> to vector<8x128xf32>
    %107 = arith.addf %106, %13 : vector<8x128xf32>
    %108 = arith.mulf %96, %107 : vector<8x128xf32>
    %109 = arith.addf %105, %108 : vector<8x128xf32>
    %110 = math.tanh %109 : vector<8x128xf32>
    %111 = arith.subf %80, %110 : vector<8x128xf32>
    %112 = arith.mulf %104, %111 : vector<8x128xf32>
    %113 = arith.addf %110, %112 : vector<8x128xf32>
    %c3_i32 = arith.constant 3 : i32
    %c8_i32_33 = arith.constant 8 : i32
    %114 = arith.muli %c3_i32, %c8_i32_33 : i32
    %115 = tpu.assume_multiple %114, 8 : i32
    %116 = arith.index_cast %115 : i32 to index
    %c0_34 = arith.constant 0 : index
    %117 = vector.load %arg9[%116, %c0_34] : memref<64x384xbf16, #tpu.memory_space<vmem>>, vector<8x384xbf16>
    %118 = arith.extf %117 : vector<8x384xbf16> to vector<8x384xf32>
    %119 = arith.truncf %113 : vector<8x128xf32> to vector<8x128xbf16>
    %c0_35 = arith.constant 0 : index
    %c0_36 = arith.constant 0 : index
    %120 = vector.load %arg3[%c0_35, %c0_36] : memref<128x384xbf16, #tpu.memory_space<vmem>>, vector<128x384xbf16>
    %cst_37 = arith.constant dense<0.000000e+00> : vector<8x384xf32>
    %121 = tpu.matmul %119, %120, %cst_37 {dimension_numbers = #tpu.dot_dimension_numbers<[1], [0], [0], [1], [0, 0, 1, 1], [], []>} : vector<8x128xbf16>, vector<128x384xbf16>, vector<8x384xf32> -> vector<8x384xf32>
    %122 = vector.extract_strided_slice %118 {offsets = [0, 0], sizes = [8, 128], strides = [1, 1]} : vector<8x384xf32> to vector<8x128xf32>
    %123 = vector.extract_strided_slice %121 {offsets = [0, 0], sizes = [8, 128], strides = [1, 1]} : vector<8x384xf32> to vector<8x128xf32>
    %124 = arith.addf %122, %123 : vector<8x128xf32>
    %125 = arith.negf %124 : vector<8x128xf32>
    %126 = math.exp %125 : vector<8x128xf32>
    %cst_38 = arith.constant 1.000000e+00 : f32
    %127 = vector.broadcast %cst_38 : f32 to vector<8x128xf32>
    %128 = arith.addf %127, %126 : vector<8x128xf32>
    %129 = arith.divf %127, %128 : vector<8x128xf32>
    %130 = vector.extract_strided_slice %118 {offsets = [0, 128], sizes = [8, 128], strides = [1, 1]} : vector<8x384xf32> to vector<8x128xf32>
    %131 = vector.extract_strided_slice %121 {offsets = [0, 128], sizes = [8, 128], strides = [1, 1]} : vector<8x384xf32> to vector<8x128xf32>
    %132 = arith.addf %130, %131 : vector<8x128xf32>
    %133 = arith.negf %132 : vector<8x128xf32>
    %134 = math.exp %133 : vector<8x128xf32>
    %cst_39 = arith.constant 1.000000e+00 : f32
    %135 = vector.broadcast %cst_39 : f32 to vector<8x128xf32>
    %136 = arith.addf %135, %134 : vector<8x128xf32>
    %137 = arith.divf %135, %136 : vector<8x128xf32>
    %138 = vector.extract_strided_slice %118 {offsets = [0, 256], sizes = [8, 128], strides = [1, 1]} : vector<8x384xf32> to vector<8x128xf32>
    %139 = vector.extract_strided_slice %121 {offsets = [0, 256], sizes = [8, 128], strides = [1, 1]} : vector<8x384xf32> to vector<8x128xf32>
    %140 = arith.addf %139, %13 : vector<8x128xf32>
    %141 = arith.mulf %129, %140 : vector<8x128xf32>
    %142 = arith.addf %138, %141 : vector<8x128xf32>
    %143 = math.tanh %142 : vector<8x128xf32>
    %144 = arith.subf %113, %143 : vector<8x128xf32>
    %145 = arith.mulf %137, %144 : vector<8x128xf32>
    %146 = arith.addf %143, %145 : vector<8x128xf32>
    %c4_i32 = arith.constant 4 : i32
    %c8_i32_40 = arith.constant 8 : i32
    %147 = arith.muli %c4_i32, %c8_i32_40 : i32
    %148 = tpu.assume_multiple %147, 8 : i32
    %149 = arith.index_cast %148 : i32 to index
    %c0_41 = arith.constant 0 : index
    %150 = vector.load %arg9[%149, %c0_41] : memref<64x384xbf16, #tpu.memory_space<vmem>>, vector<8x384xbf16>
    %151 = arith.extf %150 : vector<8x384xbf16> to vector<8x384xf32>
    %152 = arith.truncf %146 : vector<8x128xf32> to vector<8x128xbf16>
    %c0_42 = arith.constant 0 : index
    %c0_43 = arith.constant 0 : index
    %153 = vector.load %arg3[%c0_42, %c0_43] : memref<128x384xbf16, #tpu.memory_space<vmem>>, vector<128x384xbf16>
    %cst_44 = arith.constant dense<0.000000e+00> : vector<8x384xf32>
    %154 = tpu.matmul %152, %153, %cst_44 {dimension_numbers = #tpu.dot_dimension_numbers<[1], [0], [0], [1], [0, 0, 1, 1], [], []>} : vector<8x128xbf16>, vector<128x384xbf16>, vector<8x384xf32> -> vector<8x384xf32>
    %155 = vector.extract_strided_slice %151 {offsets = [0, 0], sizes = [8, 128], strides = [1, 1]} : vector<8x384xf32> to vector<8x128xf32>
    %156 = vector.extract_strided_slice %154 {offsets = [0, 0], sizes = [8, 128], strides = [1, 1]} : vector<8x384xf32> to vector<8x128xf32>
    %157 = arith.addf %155, %156 : vector<8x128xf32>
    %158 = arith.negf %157 : vector<8x128xf32>
    %159 = math.exp %158 : vector<8x128xf32>
    %cst_45 = arith.constant 1.000000e+00 : f32
    %160 = vector.broadcast %cst_45 : f32 to vector<8x128xf32>
    %161 = arith.addf %160, %159 : vector<8x128xf32>
    %162 = arith.divf %160, %161 : vector<8x128xf32>
    %163 = vector.extract_strided_slice %151 {offsets = [0, 128], sizes = [8, 128], strides = [1, 1]} : vector<8x384xf32> to vector<8x128xf32>
    %164 = vector.extract_strided_slice %154 {offsets = [0, 128], sizes = [8, 128], strides = [1, 1]} : vector<8x384xf32> to vector<8x128xf32>
    %165 = arith.addf %163, %164 : vector<8x128xf32>
    %166 = arith.negf %165 : vector<8x128xf32>
    %167 = math.exp %166 : vector<8x128xf32>
    %cst_46 = arith.constant 1.000000e+00 : f32
    %168 = vector.broadcast %cst_46 : f32 to vector<8x128xf32>
    %169 = arith.addf %168, %167 : vector<8x128xf32>
    %170 = arith.divf %168, %169 : vector<8x128xf32>
    %171 = vector.extract_strided_slice %151 {offsets = [0, 256], sizes = [8, 128], strides = [1, 1]} : vector<8x384xf32> to vector<8x128xf32>
    %172 = vector.extract_strided_slice %154 {offsets = [0, 256], sizes = [8, 128], strides = [1, 1]} : vector<8x384xf32> to vector<8x128xf32>
    %173 = arith.addf %172, %13 : vector<8x128xf32>
    %174 = arith.mulf %162, %173 : vector<8x128xf32>
    %175 = arith.addf %171, %174 : vector<8x128xf32>
    %176 = math.tanh %175 : vector<8x128xf32>
    %177 = arith.subf %146, %176 : vector<8x128xf32>
    %178 = arith.mulf %170, %177 : vector<8x128xf32>
    %179 = arith.addf %176, %178 : vector<8x128xf32>
    %c5_i32 = arith.constant 5 : i32
    %c8_i32_47 = arith.constant 8 : i32
    %180 = arith.muli %c5_i32, %c8_i32_47 : i32
    %181 = tpu.assume_multiple %180, 8 : i32
    %182 = arith.index_cast %181 : i32 to index
    %c0_48 = arith.constant 0 : index
    %183 = vector.load %arg9[%182, %c0_48] : memref<64x384xbf16, #tpu.memory_space<vmem>>, vector<8x384xbf16>
    %184 = arith.extf %183 : vector<8x384xbf16> to vector<8x384xf32>
    %185 = arith.truncf %179 : vector<8x128xf32> to vector<8x128xbf16>
    %c0_49 = arith.constant 0 : index
    %c0_50 = arith.constant 0 : index
    %186 = vector.load %arg3[%c0_49, %c0_50] : memref<128x384xbf16, #tpu.memory_space<vmem>>, vector<128x384xbf16>
    %cst_51 = arith.constant dense<0.000000e+00> : vector<8x384xf32>
    %187 = tpu.matmul %185, %186, %cst_51 {dimension_numbers = #tpu.dot_dimension_numbers<[1], [0], [0], [1], [0, 0, 1, 1], [], []>} : vector<8x128xbf16>, vector<128x384xbf16>, vector<8x384xf32> -> vector<8x384xf32>
    %188 = vector.extract_strided_slice %184 {offsets = [0, 0], sizes = [8, 128], strides = [1, 1]} : vector<8x384xf32> to vector<8x128xf32>
    %189 = vector.extract_strided_slice %187 {offsets = [0, 0], sizes = [8, 128], strides = [1, 1]} : vector<8x384xf32> to vector<8x128xf32>
    %190 = arith.addf %188, %189 : vector<8x128xf32>
    %191 = arith.negf %190 : vector<8x128xf32>
    %192 = math.exp %191 : vector<8x128xf32>
    %cst_52 = arith.constant 1.000000e+00 : f32
    %193 = vector.broadcast %cst_52 : f32 to vector<8x128xf32>
    %194 = arith.addf %193, %192 : vector<8x128xf32>
    %195 = arith.divf %193, %194 : vector<8x128xf32>
    %196 = vector.extract_strided_slice %184 {offsets = [0, 128], sizes = [8, 128], strides = [1, 1]} : vector<8x384xf32> to vector<8x128xf32>
    %197 = vector.extract_strided_slice %187 {offsets = [0, 128], sizes = [8, 128], strides = [1, 1]} : vector<8x384xf32> to vector<8x128xf32>
    %198 = arith.addf %196, %197 : vector<8x128xf32>
    %199 = arith.negf %198 : vector<8x128xf32>
    %200 = math.exp %199 : vector<8x128xf32>
    %cst_53 = arith.constant 1.000000e+00 : f32
    %201 = vector.broadcast %cst_53 : f32 to vector<8x128xf32>
    %202 = arith.addf %201, %200 : vector<8x128xf32>
    %203 = arith.divf %201, %202 : vector<8x128xf32>
    %204 = vector.extract_strided_slice %184 {offsets = [0, 256], sizes = [8, 128], strides = [1, 1]} : vector<8x384xf32> to vector<8x128xf32>
    %205 = vector.extract_strided_slice %187 {offsets = [0, 256], sizes = [8, 128], strides = [1, 1]} : vector<8x384xf32> to vector<8x128xf32>
    %206 = arith.addf %205, %13 : vector<8x128xf32>
    %207 = arith.mulf %195, %206 : vector<8x128xf32>
    %208 = arith.addf %204, %207 : vector<8x128xf32>
    %209 = math.tanh %208 : vector<8x128xf32>
    %210 = arith.subf %179, %209 : vector<8x128xf32>
    %211 = arith.mulf %203, %210 : vector<8x128xf32>
    %212 = arith.addf %209, %211 : vector<8x128xf32>
    %c6_i32 = arith.constant 6 : i32
    %c8_i32_54 = arith.constant 8 : i32
    %213 = arith.muli %c6_i32, %c8_i32_54 : i32
    %214 = tpu.assume_multiple %213, 8 : i32
    %215 = arith.index_cast %214 : i32 to index
    %c0_55 = arith.constant 0 : index
    %216 = vector.load %arg9[%215, %c0_55] : memref<64x384xbf16, #tpu.memory_space<vmem>>, vector<8x384xbf16>
    %217 = arith.extf %216 : vector<8x384xbf16> to vector<8x384xf32>
    %218 = arith.truncf %212 : vector<8x128xf32> to vector<8x128xbf16>
    %c0_56 = arith.constant 0 : index
    %c0_57 = arith.constant 0 : index
    %219 = vector.load %arg3[%c0_56, %c0_57] : memref<128x384xbf16, #tpu.memory_space<vmem>>, vector<128x384xbf16>
    %cst_58 = arith.constant dense<0.000000e+00> : vector<8x384xf32>
    %220 = tpu.matmul %218, %219, %cst_58 {dimension_numbers = #tpu.dot_dimension_numbers<[1], [0], [0], [1], [0, 0, 1, 1], [], []>} : vector<8x128xbf16>, vector<128x384xbf16>, vector<8x384xf32> -> vector<8x384xf32>
    %221 = vector.extract_strided_slice %217 {offsets = [0, 0], sizes = [8, 128], strides = [1, 1]} : vector<8x384xf32> to vector<8x128xf32>
    %222 = vector.extract_strided_slice %220 {offsets = [0, 0], sizes = [8, 128], strides = [1, 1]} : vector<8x384xf32> to vector<8x128xf32>
    %223 = arith.addf %221, %222 : vector<8x128xf32>
    %224 = arith.negf %223 : vector<8x128xf32>
    %225 = math.exp %224 : vector<8x128xf32>
    %cst_59 = arith.constant 1.000000e+00 : f32
    %226 = vector.broadcast %cst_59 : f32 to vector<8x128xf32>
    %227 = arith.addf %226, %225 : vector<8x128xf32>
    %228 = arith.divf %226, %227 : vector<8x128xf32>
    %229 = vector.extract_strided_slice %217 {offsets = [0, 128], sizes = [8, 128], strides = [1, 1]} : vector<8x384xf32> to vector<8x128xf32>
    %230 = vector.extract_strided_slice %220 {offsets = [0, 128], sizes = [8, 128], strides = [1, 1]} : vector<8x384xf32> to vector<8x128xf32>
    %231 = arith.addf %229, %230 : vector<8x128xf32>
    %232 = arith.negf %231 : vector<8x128xf32>
    %233 = math.exp %232 : vector<8x128xf32>
    %cst_60 = arith.constant 1.000000e+00 : f32
    %234 = vector.broadcast %cst_60 : f32 to vector<8x128xf32>
    %235 = arith.addf %234, %233 : vector<8x128xf32>
    %236 = arith.divf %234, %235 : vector<8x128xf32>
    %237 = vector.extract_strided_slice %217 {offsets = [0, 256], sizes = [8, 128], strides = [1, 1]} : vector<8x384xf32> to vector<8x128xf32>
    %238 = vector.extract_strided_slice %220 {offsets = [0, 256], sizes = [8, 128], strides = [1, 1]} : vector<8x384xf32> to vector<8x128xf32>
    %239 = arith.addf %238, %13 : vector<8x128xf32>
    %240 = arith.mulf %228, %239 : vector<8x128xf32>
    %241 = arith.addf %237, %240 : vector<8x128xf32>
    %242 = math.tanh %241 : vector<8x128xf32>
    %243 = arith.subf %212, %242 : vector<8x128xf32>
    %244 = arith.mulf %236, %243 : vector<8x128xf32>
    %245 = arith.addf %242, %244 : vector<8x128xf32>
    %c7_i32 = arith.constant 7 : i32
    %c8_i32_61 = arith.constant 8 : i32
    %246 = arith.muli %c7_i32, %c8_i32_61 : i32
    %247 = tpu.assume_multiple %246, 8 : i32
    %248 = arith.index_cast %247 : i32 to index
    %c0_62 = arith.constant 0 : index
    %249 = vector.load %arg9[%248, %c0_62] : memref<64x384xbf16, #tpu.memory_space<vmem>>, vector<8x384xbf16>
    %250 = arith.extf %249 : vector<8x384xbf16> to vector<8x384xf32>
    %251 = arith.truncf %245 : vector<8x128xf32> to vector<8x128xbf16>
    %c0_63 = arith.constant 0 : index
    %c0_64 = arith.constant 0 : index
    %252 = vector.load %arg3[%c0_63, %c0_64] : memref<128x384xbf16, #tpu.memory_space<vmem>>, vector<128x384xbf16>
    %cst_65 = arith.constant dense<0.000000e+00> : vector<8x384xf32>
    %253 = tpu.matmul %251, %252, %cst_65 {dimension_numbers = #tpu.dot_dimension_numbers<[1], [0], [0], [1], [0, 0, 1, 1], [], []>} : vector<8x128xbf16>, vector<128x384xbf16>, vector<8x384xf32> -> vector<8x384xf32>
    %254 = vector.extract_strided_slice %250 {offsets = [0, 0], sizes = [8, 128], strides = [1, 1]} : vector<8x384xf32> to vector<8x128xf32>
    %255 = vector.extract_strided_slice %253 {offsets = [0, 0], sizes = [8, 128], strides = [1, 1]} : vector<8x384xf32> to vector<8x128xf32>
    %256 = arith.addf %254, %255 : vector<8x128xf32>
    %257 = arith.negf %256 : vector<8x128xf32>
    %258 = math.exp %257 : vector<8x128xf32>
    %cst_66 = arith.constant 1.000000e+00 : f32
    %259 = vector.broadcast %cst_66 : f32 to vector<8x128xf32>
    %260 = arith.addf %259, %258 : vector<8x128xf32>
    %261 = arith.divf %259, %260 : vector<8x128xf32>
    %262 = vector.extract_strided_slice %250 {offsets = [0, 128], sizes = [8, 128], strides = [1, 1]} : vector<8x384xf32> to vector<8x128xf32>
    %263 = vector.extract_strided_slice %253 {offsets = [0, 128], sizes = [8, 128], strides = [1, 1]} : vector<8x384xf32> to vector<8x128xf32>
    %264 = arith.addf %262, %263 : vector<8x128xf32>
    %265 = arith.negf %264 : vector<8x128xf32>
    %266 = math.exp %265 : vector<8x128xf32>
    %cst_67 = arith.constant 1.000000e+00 : f32
    %267 = vector.broadcast %cst_67 : f32 to vector<8x128xf32>
    %268 = arith.addf %267, %266 : vector<8x128xf32>
    %269 = arith.divf %267, %268 : vector<8x128xf32>
    %270 = vector.extract_strided_slice %250 {offsets = [0, 256], sizes = [8, 128], strides = [1, 1]} : vector<8x384xf32> to vector<8x128xf32>
    %271 = vector.extract_strided_slice %253 {offsets = [0, 256], sizes = [8, 128], strides = [1, 1]} : vector<8x384xf32> to vector<8x128xf32>
    %272 = arith.addf %271, %13 : vector<8x128xf32>
    %273 = arith.mulf %261, %272 : vector<8x128xf32>
    %274 = arith.addf %270, %273 : vector<8x128xf32>
    %275 = math.tanh %274 : vector<8x128xf32>
    %276 = arith.subf %245, %275 : vector<8x128xf32>
    %277 = arith.mulf %269, %276 : vector<8x128xf32>
    %278 = arith.addf %275, %277 : vector<8x128xf32>
    %c8_i32_68 = arith.constant 8 : i32
    %c0_69 = arith.constant 0 : index
    %c0_70 = arith.constant 0 : index
    %279 = vector.load %arg10[%c0_69, %c0_70] : memref<8x128xf32, #tpu.memory_space<vmem>>, vector<8x128xf32>
    tpu.vector_store %arg10[%c0_69, %c0_70], %278 {strides = array<i32>} : memref<8x128xf32, #tpu.memory_space<vmem>>, vector<8x128xf32>,
    %c0_i32_71 = arith.constant 0 : i32
    %280 = arith.cmpi eq, %arg0, %c0_i32_71 : i32
    %281 = arith.extui %280 : i1 to i32
    %c0_i32_72 = arith.constant 0 : i32
    %282 = arith.cmpi ne, %281, %c0_i32_72 : i32
    scf.if %282 {
      %283 = arith.truncf %278 : vector<8x128xf32> to vector<8x128xbf16>
      %c0_73 = arith.constant 0 : index
      %c0_74 = arith.constant 0 : index
      %284 = vector.load %arg6[%c0_73, %c0_74] : memref<128x128xbf16, #tpu.memory_space<vmem>>, vector<128x128xbf16>
      %cst_75 = arith.constant dense<0.000000e+00> : vector<8x128xf32>
      %285 = tpu.matmul %283, %284, %cst_75 {dimension_numbers = #tpu.dot_dimension_numbers<[1], [0], [0], [1], [0, 0, 1, 1], [], []>} : vector<8x128xbf16>, vector<128x128xbf16>, vector<8x128xf32> -> vector<8x128xf32>
      %c0_76 = arith.constant 0 : index
      %c0_77 = arith.constant 0 : index
      %286 = vector.load %arg7[%c0_76, %c0_77] : memref<1x128xf32, #tpu.memory_space<vmem>>, vector<1x128xf32>
      %287 = vector.broadcast %286 : vector<1x128xf32> to vector<8x128xf32>
      %288 = arith.addf %285, %287 : vector<8x128xf32>
      %c0_78 = arith.constant 0 : index
      %c0_79 = arith.constant 0 : index
      %289 = vector.load %arg8[%c0_78, %c0_79] : memref<8x128xf32, #tpu.memory_space<vmem>>, vector<8x128xf32>
      tpu.vector_store %arg8[%c0_78, %c0_79], %288 {strides = array<i32>} : memref<8x128xf32, #tpu.memory_space<vmem>>, vector<8x128xf32>,
    } else {
    }
    return
  }
  func.func @transform_0(%arg0: i32) -> (i32, i32) {
    %c0_i32 = arith.constant 0 : i32
    %c0_i32_0 = arith.constant 0 : i32
    return %arg0, %c0_i32 : i32, i32
  }
  func.func @transform_1(%arg0: i32) -> (i32, i32) {
    %c0_i32 = arith.constant 0 : i32
    %c0_i32_0 = arith.constant 0 : i32
    %c0_i32_1 = arith.constant 0 : i32
    return %c0_i32, %c0_i32_0 : i32, i32
  }
  func.func @transform_2(%arg0: i32) -> (i32, i32) {
    %c0_i32 = arith.constant 0 : i32
    %c0_i32_0 = arith.constant 0 : i32
    %c0_i32_1 = arith.constant 0 : i32
    return %c0_i32, %c0_i32_0 : i32, i32
  }
  func.func @transform_3(%arg0: i32) -> (i32, i32) {
    %c0_i32 = arith.constant 0 : i32
    %c0_i32_0 = arith.constant 0 : i32
    %c0_i32_1 = arith.constant 0 : i32
    return %c0_i32, %c0_i32_0 : i32, i32
  }
  func.func @transform_4(%arg0: i32) -> (i32, i32) {
    %c0_i32 = arith.constant 0 : i32
    %c0_i32_0 = arith.constant 0 : i32
    %c0_i32_1 = arith.constant 0 : i32
    return %c0_i32, %c0_i32_0 : i32, i32
  }
  func.func @transform_5(%arg0: i32) -> (i32, i32) {
    %c0_i32 = arith.constant 0 : i32
    %c0_i32_0 = arith.constant 0 : i32
    %c0_i32_1 = arith.constant 0 : i32
    return %c0_i32, %c0_i32_0 : i32, i32
  }
  func.func @transform_6(%arg0: i32) -> (i32, i32) {
    %c0_i32 = arith.constant 0 : i32
    %c0_i32_0 = arith.constant 0 : i32
    %c0_i32_1 = arith.constant 0 : i32
    return %c0_i32, %c0_i32_0 : i32, i32
  }
  func.func @transform_7(%arg0: i32) -> (i32, i32) {
    %c0_i32 = arith.constant 0 : i32
    %c0_i32_0 = arith.constant 0 : i32
    %c0_i32_1 = arith.constant 0 : i32
    return %c0_i32, %c0_i32_0 : i32, i32
  }
}

</mosaic_0001>

<bundles_post_ra>
// kernel: tpu_custom_call.1
= control target key start
LH: loop header
LB: loop body
LE: loop exit
PB: predicated region body
PF: predicated region fallthrough
CT: control target
= control target key end

     0   :  { %12 = vsyncpa [#allocation5], 0  ;;  %s2978_s0 = inlined_call_operand.hbm [shape: bf16[64,128], index: 0, kind: input, shape index: {}]   ;;  %s2979_s1 = inlined_call_operand.hbm [shape: bf16[128,384], index: 1, kind: input, shape index: {}]   ;;  %s2980_s2 = inlined_call_operand.hbm [shape: bf16[128,384], index: 2, kind: input, shape index: {}]   ;;  %s2981_s3 = inlined_call_operand.vmem [shape: f32[1,384], index: 3, kind: input, shape index: {}]   ;;  %s2982_s4 = inlined_call_operand.vmem [shape: f32[1,128], index: 4, kind: input, shape index: {}]   ;;  %s2983_s5 = inlined_call_operand.hbm [shape: bf16[128,128], index: 5, kind: input, shape index: {}]   ;;  %s2984_s6 = inlined_call_operand.vmem [shape: f32[1,128], index: 6, kind: input, shape index: {}]   ;;  %s2985_s7 = inlined_call_operand.hbm [shape: f32[8,128], index: 7, kind: output, shape index: {}]  }
   0x1   :  { %13 = vsyncpa [#allocation8], 0 }
   0x2   :  { %14 = vsyncpa [#allocation11], 0 }
   0x3   :  { %15 = vsyncpa [#allocation6], 0  ;;  %s2436_s24 = smov [#allocation7]  }
   0x4   :  { %s33_s25 = sshll.u32 %s2436_s24, 4  ;;  %s34_s25 = int_to_ptr.vmem [resolvable:$true] %s33_s25 }
   0x5   :  { %s2336_s26 = scalar_lea.vmem %s34_s25, 3072  ;;  %p2341_p1 = scmp.lt.s32.totalorder %s34_s25, %s34_s25 }
   0x6   :  { %p2337_p0 = scmp.ne.s32.totalorder %s34_s25, %s2336_s26  ;;  %p2342_p2 = scmp.lt.s32.totalorder %s2336_s26, %s2336_s26 }
   0x8   :  { %p2343_p3 = por %p2342_p2, %p2341_p1 }
   0xa   :  { %p2344_p4 = pnand %p2343_p3, %p2337_p0 }
   0xc   :  { %2347 = shalt.err (!%p2344_p4)
}
   0xd   :  { %s2437_s27 = smov 192   ;;  %s2438_s28 = smov 12  }
   0xe   :  { %39 = dma.hbm_to_vmem [thread:$0]  %s2979_s1, 3072, %s34_s25, [#allocation8], %s2437_s27, %s2437_s27, %s2438_s28  }
   0xf   :  { %s2439_s8 = smov [#allocation4]  }
  0x10   :  { %s21_s9 = sshll.u32 %s2439_s8, 4  ;;  %s22_s9 = int_to_ptr.vmem [resolvable:$true] %s21_s9 }
  0x11   :  { %s2356_s10 = scalar_lea.vmem %s22_s9, 512  ;;  %p2361_p6 = scmp.lt.s32.totalorder %s22_s9, %s22_s9 }
  0x12   :  { %p2357_p5 = scmp.ne.s32.totalorder %s22_s9, %s2356_s10  ;;  %p2362_p7 = scmp.lt.s32.totalorder %s2356_s10, %s2356_s10 }
  0x14   :  { %p2363_p8 = por %p2362_p7, %p2361_p6 }
  0x16   :  { %p2364_p9 = pnand %p2363_p8, %p2357_p5 }
  0x18   :  { %2367 = shalt.err (!%p2364_p9)
}
  0x19   :  { %s2440_s11 = smov 64   ;;  %s2441_s12 = smov 4  }
  0x1a   :  { %27 = dma.hbm_to_vmem [thread:$0]  %s2978_s0, 512, %s22_s9, [#allocation5], %s2440_s11, %s2440_s11, %s2441_s12  }
  0x1b   :  { %s2442_s15 = smov [#allocation9]   ;;  %s2443_s17 = smov [#allocation10]  }
  0x1c   :  { %s45_s16 = sshll.u32 %s2442_s15, 4  ;;  %s61_s1 = sshll.u32 %s2443_s17, 4  ;;  %s46_s16 = int_to_ptr.vmem [resolvable:$true] %s45_s16  ;;  %s62_s1 = int_to_ptr.vmem [resolvable:$true] %s61_s1 }
  0x1d   :  { %s2376_s18 = scalar_lea.vmem %s46_s16, 3072  ;;  %p2381_p11 = scmp.lt.s32.totalorder %s46_s16, %s46_s16 }
  0x1e   :  { %p2377_p10 = scmp.ne.s32.totalorder %s46_s16, %s2376_s18  ;;  %p2382_p12 = scmp.lt.s32.totalorder %s2376_s18, %s2376_s18 }
  0x20   :  { %p2383_p13 = por %p2382_p12, %p2381_p11 }
  0x22   :  { %p2384_p0 = pnand %p2383_p13, %p2377_p10 }
  0x24   :  { %2387 = shalt.err (!%p2384_p0)
}
  0x25   :  { %51 = dma.hbm_to_vmem [thread:$0]  %s2980_s2, 3072, %s46_s16, [#allocation8], %s2437_s27, %s2437_s27, %s2438_s28  }
  0x26   :  { %s2396_s0 = scalar_lea.vmem %s62_s1, 1024  ;;  %p2401_p2 = scmp.lt.s32.totalorder %s62_s1, %s62_s1 }
  0x27   :  { %p2397_p1 = scmp.ne.s32.totalorder %s62_s1, %s2396_s0  ;;  %p2402_p3 = scmp.lt.s32.totalorder %s2396_s0, %s2396_s0 }
  0x29   :  { %p2403_p4 = por %p2402_p3, %p2401_p2 }
  0x2b   :  { %p2404_p5 = pnand %p2403_p4, %p2397_p1 }
  0x2d   :  { %2407 = shalt.err (!%p2404_p5)
}
  0x2e   :  { %67 = dma.hbm_to_vmem [thread:$0]  %s2983_s5, 1024, %s62_s1, [#allocation11], %s2440_s11, %s2440_s11, %s2441_s12  }
  0x2f   :  { %2428 = dma.done.wait [#allocation5], 512  }
  0x30   :  { %2429 = vsyncadd [#allocation5], 4294966784 }
  0x31   :  { %2430 = dma.done.wait [#allocation8], 6144  }
  0x32   :  { %2431 = vsyncadd [#allocation8], 4294961152 }
  0x33   :  { %2432 = dma.done.wait [#allocation11], 1024  }
  0x34   :  { %2433 = vsyncadd [#allocation11], 4294966272  ;;  %v2444_v0 = vmov 0   ;;  %v2148_v1 = vld [vmem:[#allocation7 + $0xac] ss:$12 sps:$4 sm:$0xff]   ;;  %v2174_v12 = vld [vmem:[#allocation4] sm:$0xff]   ;;  %v130_v55 = vlaneseq }
  0x35   :  { %329 = vmatprep.mubr.bf16.mxu0 %v2444_v0  ;;  %v2150_v2 = vld [vmem:[#allocation7 + $0xa8] ss:$12 sps:$4 sm:$0xff]   ;;  %297 = vmatprep.subr.bf16.mxu0 %v2148_v1  ;;  %v2153_v4 = vld [vmem:[#allocation7 + $0x90] ss:$12 sps:$4 sm:$0xff]   ;;  %v2156_v6 = vld [vmem:[#allocation7 + $0x78] ss:$12 sps:$4 sm:$0xff]  }
  0x36   :  { %v2151_v3 = vld [vmem:[#allocation7 + $0x94] ss:$12 sps:$4 sm:$0xff]   ;;  %298 = vmatpush1.bf16.msra.mxu0 %v2150_v2  ;;  %v2154_v5 = vld [vmem:[#allocation7 + $0x7c] ss:$12 sps:$4 sm:$0xff]   ;;  %v2157_v7 = vld [vmem:[#allocation7 + $0x64] ss:$12 sps:$4 sm:$0xff]   ;;  %1947 = vmatprep.mubr.bf16.mxu1 %v2174_v12 }
  0x37   :  { %299 = vmatprep.subr.bf16.mxu0 %v2151_v3  ;;  %v2169_v8 = vld [vmem:[#allocation7 + $0xb0] ss:$12 sps:$4 sm:$0xff]   ;;  %v2159_v9 = vld [vmem:[#allocation7 + $0x60] ss:$12 sps:$4 sm:$0xff]   ;;  %v2173_v11 = vld [vmem:[#allocation7 + $0x98] ss:$12 sps:$4 sm:$0xff]  }
  0x38   :  { %v2160_v10 = vld [vmem:[#allocation7 + $0x4c] ss:$12 sps:$4 sm:$0xff]   ;;  %1931 = vmatprep.subr.bf16.mxu1 %v2169_v8  ;;  %v2162_v13 = vld [vmem:[#allocation7 + $0x48] ss:$12 sps:$4 sm:$0xff]   ;;  %v2165_v17 = vld [vmem:[#allocation7 + $0x30] ss:$12 sps:$4 sm:$0xff]  }
  0x39   :  { %1932 = vmatpush3.bf16.msra.mxu1 %v2169_v8  ;;  %v2178_v14 = vld [vmem:[#allocation7 + $0x80] ss:$12 sps:$4 sm:$0xff]   ;;  %v2182_v16 = vld [vmem:[#allocation7 + $0x68] ss:$12 sps:$4 sm:$0xff]   ;;  %v2187_v19 = vld [vmem:[#allocation7 + $0x50] ss:$12 sps:$4 sm:$0xff]  }
  0x3a   :  { %300 = vmatpush1.bf16.msra.mxu0 %v2153_v4  ;;  %1933 = vmatprep.subr.bf16.mxu1 %v2173_v11  ;;  %v2163_v15 = vld [vmem:[#allocation7 + $0x34] ss:$12 sps:$4 sm:$0xff]   ;;  %v2166_v18 = vld [vmem:[#allocation7 + $0x1c] ss:$12 sps:$4 sm:$0xff]   ;;  %v2168_v20 = vld [vmem:[#allocation7 + $0x18] ss:$12 sps:$4 sm:$0xff]  }
  0x3b   :  { %301 = vmatprep.subr.bf16.mxu0 %v2154_v5  ;;  %v2170_v21 = vld [vmem:[#allocation7 + $0x4] ss:$12 sps:$4 sm:$0xff]   ;;  %v2172_v23 = vld [vmem:[#allocation7] ss:$12 sps:$4 sm:$0xff]   ;;  %v2510_v26 = vld [vmem:[#allocation9 + $0xa8] ss:$12 sps:$4 sm:$0xff]  }
  0x3c   :  { %v2191_v22 = vld [vmem:[#allocation7 + $0x38] ss:$12 sps:$4 sm:$0xff]   ;;  %v2196_v25 = vld [vmem:[#allocation7 + $0x20] ss:$12 sps:$4 sm:$0xff]   ;;  %v2200_v28 = vld [vmem:[#allocation7 + $0x8] ss:$12 sps:$4 sm:$0xff]  }
  0x3d   :  { %1934 = vmatpush3.bf16.msra.mxu1 %v2173_v11  ;;  %v2508_v24 = vld [vmem:[#allocation9 + $0xac] ss:$12 sps:$4 sm:$0xff]   ;;  %v2513_v27 = vld [vmem:[#allocation9 + $0x94] ss:$12 sps:$4 sm:$0xff]   ;;  %v2516_v29 = vld [vmem:[#allocation9 + $0x90] ss:$12 sps:$4 sm:$0xff]  }
  0x3e   :  { %302 = vmatpush1.bf16.msra.mxu0 %v2156_v6  ;;  %1935 = vmatprep.subr.bf16.mxu1 %v2178_v14  ;;  %v2520_v30 = vld [vmem:[#allocation9 + $0x7c] ss:$12 sps:$4 sm:$0xff]   ;;  %v2523_v32 = vld [vmem:[#allocation9 + $0x78] ss:$12 sps:$4 sm:$0xff]   ;;  %v2528_v34 = vld [vmem:[#allocation9 + $0x60] ss:$12 sps:$4 sm:$0xff]  }
  0x3f   :  { %303 = vmatprep.subr.bf16.mxu0 %v2157_v7  ;;  %v2183_v31 = vld [vmem:[#allocation4 + $0x8] sm:$0xff]   ;;  %v2526_v33 = vld [vmem:[#allocation9 + $0x64] ss:$12 sps:$4 sm:$0xff]   ;;  %v2445_v38 = vmov 0.0   ;;  %v2546_v41 = vld [vmem:[#allocation9 + $0x34] ss:$12 sps:$4 sm:$0xff]  }
  0x40   :  { %v2192_v35 = vld [vmem:[#allocation4 + $0x10] sm:$0xff]   ;;  %v2532_v37 = vld [vmem:[#allocation9 + $0x4c] ss:$12 sps:$4 sm:$0xff]   ;;  %v2557_v45 = vld [vmem:[#allocation9 + $0x1c] ss:$12 sps:$4 sm:$0xff]   ;;  %vm2446_vm0 = vmmov 0  }
  0x41   :  { %1936 = vmatpush3.bf16.msra.mxu1 %v2178_v14  ;;  %v2530_v36 = vld [vmem:[#allocation9 + $0xb0] ss:$12 sps:$4 sm:$0xff]   ;;  %v2537_v39 = vld [vmem:[#allocation9 + $0x98] ss:$12 sps:$4 sm:$0xff]   ;;  %v2543_v40 = vld [vmem:[#allocation9 + $0x48] ss:$12 sps:$4 sm:$0xff]  }
  0x42   :  { %304 = vmatpush1.bf16.msra.mxu0 %v2159_v9  ;;  %1937 = vmatprep.subr.bf16.mxu1 %v2182_v16  ;;  %v2549_v42 = vld [vmem:[#allocation9 + $0x80] ss:$12 sps:$4 sm:$0xff]   ;;  %v2201_v43 = vld [vmem:[#allocation4 + $0x18] sm:$0xff]   ;;  %v2560_v46 = vld [vmem:[#allocation9 + $0x68] ss:$12 sps:$4 sm:$0xff]   ;;  %v2447_v53 = vmov 0.0|0.0  }
  0x43   :  { %305 = vmatprep.subr.bf16.mxu0 %v2160_v10  ;;  %v2553_v44 = vld [vmem:[#allocation9 + $0x30] ss:$12 sps:$4 sm:$0xff]   ;;  %v2566_v47 = vld [vmem:[#allocation9 + $0x18] ss:$12 sps:$4 sm:$0xff]   ;;  %v2576_v50 = vld [vmem:[#allocation9] ss:$12 sps:$4 sm:$0xff]  }
  0x44   :  { %v2569_v48 = vld [vmem:[#allocation9 + $0x4] ss:$12 sps:$4 sm:$0xff]   ;;  %v2587_v52 = vld [vmem:[#allocation9 + $0x20] ss:$12 sps:$4 sm:$0xff]   ;;  %v2594_v54 = vld [vmem:[#allocation9 + $0x8] ss:$12 sps:$4 sm:$0xff]  }
  0x45   :  { %1938 = vmatpush3.bf16.msra.mxu1 %v2182_v16  ;;  %v2572_v49 = vld [vmem:[#allocation9 + $0x50] ss:$12 sps:$4 sm:$0xff]   ;;  %v2581_v51 = vld [vmem:[#allocation9 + $0x38] ss:$12 sps:$4 sm:$0xff]   ;;  %v131_v56 = vshrl.u32 %v130_v55, 7  ;;  %s2448_s25 = smov [#allocation12]  }
  0x46   :  { %306 = vmatpush1.bf16.msra.mxu0 %v2162_v13  ;;  %1939 = vmatprep.subr.bf16.mxu1 %v2187_v19  ;;  %v128_v59 = vld [vmem:[%s2981_s3] sm:$0x7]  ;;  %s1710_s26 = sshll.u32 %s2448_s25, 4  ;;  %s1711_s26 = int_to_ptr.vmem [resolvable:$true] %s1710_s26 }
  0x47   :  { %307 = vmatprep.subr.bf16.mxu0 %v2163_v15  ;;  %v132_v57 = vsub.s32 0, %v131_v56  ;;  %v136_v58 = vsub.s32 1, %v131_v56  ;;  %v140_v3 = vsub.s32 2, %v131_v56  ;;  %s2408_s27 = scalar_lea.vmem %s1711_s26, 128  ;;  %p2413_p7 = scmp.lt.s32.totalorder %s1711_s26, %s1711_s26 }
  0x48   :  { %p2409_p6 = scmp.ne.s32.totalorder %s1711_s26, %s2408_s27  ;;  %p2414_p8 = scmp.lt.s32.totalorder %s2408_s27, %s2408_s27 }
  0x49   :  { %1940 = vmatpush3.bf16.msra.mxu1 %v2187_v19  ;;  %v2634_v60 = vrot.slane %v128_v59, %v132_v57  ;;  %v2636_v61 = vrot.slane %v128_v59, %v136_v58  ;;  %v141_v9 = vrot.slane %v128_v59, %v140_v3 }
  0x4a   :  { %308 = vmatpush1.bf16.msra.mxu0 %v2165_v17  ;;  %1941 = vmatprep.subr.bf16.mxu1 %v2191_v22  ;;  %p2415_p9 = por %p2414_p8, %p2413_p7 }
  0x4b   :  { %309 = vmatprep.subr.bf16.mxu0 %v2166_v18 }
  0x4c   :  { %p2416_p10 = pnand %p2415_p9, %p2409_p6 }
  0x4d   :  { %1942 = vmatpush3.bf16.msra.mxu1 %v2191_v22 }
  0x4e   :  { %310 = vmatpush1.bf16.msra.mxu0 %v2168_v20  ;;  %1943 = vmatprep.subr.bf16.mxu1 %v2196_v25 }
  0x4f   :  { %311 = vmatprep.subr.bf16.mxu0 %v2170_v21 }
  0x51   :  { %1944 = vmatpush3.bf16.msra.mxu1 %v2196_v25 }
  0x52   :  { %312 = vmatpush1.bf16.msra.mxu0 %v2172_v23  ;;  %1945 = vmatprep.subr.bf16.mxu1 %v2200_v28 }
  0x53   :  { %708 = vmatprep.subr.bf16.mxu0 %v2508_v24 }
  0x55   :  { %330 = vmatmul.mubr.bf16.vlgmr.msra.gmra.mxu0 %v2174_v12  ;;  %1946 = vmatpush3.bf16.msra.mxu1 %v2200_v28 }
  0x56   :  { %709 = vmatpush1.bf16.msra.mxu0 %v2510_v26  ;;  %339 = vmatprep.mubr.bf16.mxu0 %v2444_v0 }
  0x57   :  { %710 = vmatprep.subr.bf16.mxu0 %v2513_v27  ;;  %1955 = vmatprep.subr.bf16.mxu1 %v2445_v38 }
  0x58   :  { %1948 = vmatmul.mubr.bf16.vlgmr.msra.gmra.mxu1 %v2183_v31 }
  0x59   :  { %1956 = vmatpush3.bf16.msra.mxu1 %v2530_v36  ;;  %1951 = vmatprep.mubr.bf16.mxu1 %v2192_v35 }
  0x5a   :  { %711 = vmatpush1.bf16.msra.mxu0 %v2516_v29  ;;  %1957 = vmatprep.subr.bf16.mxu1 %v2445_v38 }
  0x5b   :  { %712 = vmatprep.subr.bf16.mxu0 %v2520_v30 }
  0x5d   :  { %340 = vmatmul.mubr.bf16.gmra.mxu0 %v2183_v31  ;;  %1958 = vmatpush3.bf16.msra.mxu1 %v2537_v39 }
  0x5e   :  { %713 = vmatpush1.bf16.msra.mxu0 %v2523_v32  ;;  %349 = vmatprep.mubr.bf16.mxu0 %v2444_v0 }
  0x5f   :  { %714 = vmatprep.subr.bf16.mxu0 %v2526_v33  ;;  %1959 = vmatprep.subr.bf16.mxu1 %v2445_v38 }
  0x60   :  { %1952 = vmatmul.mubr.bf16.gmra.mxu1 %v2201_v43 }
  0x61   :  { %1960 = vmatpush3.bf16.msra.mxu1 %v2549_v42  ;;  %1971 = vmatprep.mubr.msk.bf16.mxu1 %vm2446_vm0, %v2445_v38 }
  0x62   :  { %715 = vmatpush1.bf16.msra.mxu0 %v2528_v34  ;;  %1961 = vmatprep.subr.bf16.mxu1 %v2445_v38 }
  0x63   :  { %716 = vmatprep.subr.bf16.mxu0 %v2532_v37 }
  0x65   :  { %350 = vmatmul.mubr.bf16.gmra.mxu0 %v2192_v35  ;;  %1962 = vmatpush3.bf16.msra.mxu1 %v2560_v46 }
  0x66   :  { %717 = vmatpush1.bf16.msra.mxu0 %v2543_v40  ;;  %359 = vmatprep.mubr.bf16.mxu0 %v2444_v0 }
  0x67   :  { %718 = vmatprep.subr.bf16.mxu0 %v2546_v41  ;;  %1963 = vmatprep.subr.bf16.mxu1 %v2445_v38 }
  0x69   :  { %1964 = vmatpush3.bf16.msra.mxu1 %v2572_v49 }
  0x6a   :  { %719 = vmatpush1.bf16.msra.mxu0 %v2553_v44  ;;  %1965 = vmatprep.subr.bf16.mxu1 %v2445_v38 }
  0x6b   :  { %720 = vmatprep.subr.bf16.mxu0 %v2557_v45 }
  0x6d   :  { %360 = vmatmul.mubr.bf16.gmra.mxu0 %v2201_v43  ;;  %1966 = vmatpush3.bf16.msra.mxu1 %v2581_v51 }
  0x6e   :  { %721 = vmatpush1.bf16.msra.mxu0 %v2566_v47  ;;  %740 = vmatprep.mubr.bf16.mxu0 %v2444_v0 }
  0x6f   :  { %722 = vmatprep.subr.bf16.mxu0 %v2569_v48  ;;  %1967 = vmatprep.subr.bf16.mxu1 %v2445_v38 }
  0x71   :  { %1968 = vmatpush3.bf16.msra.mxu1 %v2587_v52 }
  0x72   :  { %723 = vmatpush1.bf16.msra.mxu0 %v2576_v50  ;;  %1969 = vmatprep.subr.bf16.mxu1 %v2445_v38 }
  0x73   :  { %819 = vmatprep.subr.bf16.mxu0 %v2508_v24 }
  0x75   :  { %741 = vmatmul.mubr.bf16.vlgmr.msra.gmra.mxu0 %v2447_v53  ;;  %1970 = vmatpush3.bf16.msra.mxu1 %v2594_v54 }
  0x76   :  { %820 = vmatpush1.bf16.msra.mxu0 %v2510_v26  ;;  %851 = vmatprep.mubr.bf16.mxu0 %v2444_v0 }
  0x77   :  { %821 = vmatprep.subr.bf16.mxu0 %v2513_v27  ;;  %1975 = vmatprep.subr.bf16.mxu1 %v2445_v38 }
  0x78   :  { %1972 = vmatmul.mubr.bf16.vlgmr.msra.gmra.mxu1 %v2447_v53 }
  0x79   :  { %1976 = vmatpush3.bf16.msra.mxu1 %v2530_v36  ;;  %1991 = vmatprep.mubr.msk.bf16.mxu1 %vm2446_vm0, %v2445_v38 }
  0x7a   :  { %822 = vmatpush1.bf16.msra.mxu0 %v2516_v29  ;;  %1977 = vmatprep.subr.bf16.mxu1 %v2445_v38 }
  0x7b   :  { %823 = vmatprep.subr.bf16.mxu0 %v2520_v30 }
  0x7d   :  { %1978 = vmatpush3.bf16.msra.mxu1 %v2537_v39 }
  0x7e   :  { %824 = vmatpush1.bf16.msra.mxu0 %v2523_v32  ;;  %1979 = vmatprep.subr.bf16.mxu1 %v2445_v38 }
  0x7f   :  { %825 = vmatprep.subr.bf16.mxu0 %v2526_v33 }
  0x81   :  { %1980 = vmatpush3.bf16.msra.mxu1 %v2549_v42 }
  0x82   :  { %826 = vmatpush1.bf16.msra.mxu0 %v2528_v34  ;;  %1981 = vmatprep.subr.bf16.mxu1 %v2445_v38 }
  0x83   :  { %827 = vmatprep.subr.bf16.mxu0 %v2532_v37 }
  0x85   :  { %1982 = vmatpush3.bf16.msra.mxu1 %v2560_v46 }
  0x86   :  { %828 = vmatpush1.bf16.msra.mxu0 %v2543_v40  ;;  %1983 = vmatprep.subr.bf16.mxu1 %v2445_v38 }
  0x87   :  { %829 = vmatprep.subr.bf16.mxu0 %v2546_v41 }
  0x89   :  { %1984 = vmatpush3.bf16.msra.mxu1 %v2572_v49 }
  0x8a   :  { %830 = vmatpush1.bf16.msra.mxu0 %v2553_v44  ;;  %1985 = vmatprep.subr.bf16.mxu1 %v2445_v38 }
  0x8b   :  { %831 = vmatprep.subr.bf16.mxu0 %v2557_v45 }
  0x8d   :  { %1986 = vmatpush3.bf16.msra.mxu1 %v2581_v51 }
  0x8e   :  { %832 = vmatpush1.bf16.msra.mxu0 %v2566_v47  ;;  %1987 = vmatprep.subr.bf16.mxu1 %v2445_v38 }
  0x8f   :  { %833 = vmatprep.subr.bf16.mxu0 %v2569_v48 }
  0x91   :  { %1988 = vmatpush3.bf16.msra.mxu1 %v2587_v52 }
  0x92   :  { %834 = vmatpush1.bf16.msra.mxu0 %v2576_v50  ;;  %1989 = vmatprep.subr.bf16.mxu1 %v2445_v38 }
  0x93   :  { %930 = vmatprep.subr.bf16.mxu0 %v2508_v24 }
  0x95   :  { %1990 = vmatpush3.bf16.msra.mxu1 %v2594_v54 }
  0x96   :  { %1995 = vmatprep.subr.bf16.mxu1 %v2445_v38 }
 0x115   :  { %v331_v62 = vpop.f32.mrf.mxu0 }
 0x116   :  { %v332_v1 = vadd.f32 %v331_v62, %v2634_v60 }
 0x117   :  { %v333_v63 = vpop.f32.mrf.mxu0 }
 0x118   :  { %v334_v2 = vadd.f32 %v333_v63, %v2636_v61  ;;  %v1949_v13 = vpop.f32.mrf.mxu1 }
 0x119   :  { %v335_v4 = vpop.f32.mrf.mxu0  ;;  %v413_v16 = vadd.f32 %v1949_v13, %v141_v9 }
 0x11a   :  { %v2640_v5 = vpack.c.bf16 %v334_v2, %v332_v1  ;;  %v336_v7 = vadd.f32 %v335_v4, %v2634_v60  ;;  %v404_v18 = vpop.f32.mrf.mxu1 }
 0x11b   :  { %v337_v6 = vpop.f32.mrf.mxu0  ;;  %v1827_v20 = vpack.c.bf16 %v413_v16, %v413_v16  ;;  %v405_v21 = vadd.f32 %v404_v18, %v141_v9 }
 0x11c   :  { %v338_v8 = vadd.f32 %v337_v6, %v2636_v61  ;;  %v1950_v23 = vpop.f32.mrf.mxu1 }
 0x11d   :  { %v341_v10 = vpop.f32.mrf.mxu0  ;;  %520 = vst [vmem:[#allocation2 + $0x20] sm:$0xf] %v1827_v20  ;;  %v1823_v31 = vpack.c.bf16 %v405_v21, %v405_v21  ;;  %v416_v35 = vadd.f32 %v1950_v23, %v141_v9 }
 0x11e   :  { %v2644_v11 = vpack.c.bf16 %v338_v8, %v336_v7  ;;  %v342_v14 = vadd.f32 %v341_v10, %v2634_v60  ;;  %v407_v53 = vpop.f32.mrf.mxu1 }
 0x11f   :  { %v343_v12 = vpop.f32.mrf.mxu0  ;;  %516 = vst [vmem:[#allocation2 + $0x8] sm:$0xf] %v1823_v31  ;;  %v1829_v56 = vpack.c.bf16 %v416_v35, %v416_v35  ;;  %v408_v57 = vadd.f32 %v407_v53, %v141_v9 }
 0x120   :  { %v344_v15 = vadd.f32 %v343_v12, %v2636_v61  ;;  %v1953_v59 = vpop.f32.mrf.mxu1 }
 0x121   :  { %v345_v17 = vpop.f32.mrf.mxu0  ;;  %522 = vst [vmem:[#allocation2 + $0x2c] sm:$0xf] %v1829_v56  ;;  %v1825_v1 = vpack.c.bf16 %v408_v57, %v408_v57  ;;  %v429_v2 = vadd.f32 %v1953_v59, %v141_v9 }
 0x122   :  { %v2648_v19 = vpack.c.bf16 %v344_v15, %v342_v14  ;;  %v346_v25 = vadd.f32 %v345_v17, %v2634_v60  ;;  %v420_v4 = vpop.f32.mrf.mxu1 }
 0x123   :  { %v347_v22 = vpop.f32.mrf.mxu0  ;;  %518 = vst [vmem:[#allocation2 + $0x14] sm:$0xf] %v1825_v1  ;;  %v1835_v7 = vpack.c.bf16 %v429_v2, %v429_v2  ;;  %v421_v8 = vadd.f32 %v420_v4, %v141_v9  ;;  %v545_v4 = vunpack.c.h.bf16 %v2640_v5 }
 0x124   :  { %v348_v28 = vadd.f32 %v347_v22, %v2636_v61  ;;  %v1954_v12 = vpop.f32.mrf.mxu1 }
 0x125   :  { %v351_v43 = vpop.f32.mrf.mxu0  ;;  %528 = vst [vmem:[#allocation2 + $0x50] sm:$0xf] %v1835_v7  ;;  %v1831_v15 = vpack.c.bf16 %v421_v8, %v421_v8  ;;  %v432_v16 = vadd.f32 %v1954_v12, %v141_v9 }
 0x126   :  { %v2652_v55 = vpack.c.bf16 %v348_v28, %v346_v25  ;;  %v352_v62 = vadd.f32 %v351_v43, %v2634_v60  ;;  %v423_v18 = vpop.f32.mrf.mxu1 }
 0x127   :  { %v353_v58 = vpop.f32.mrf.mxu0  ;;  %524 = vst [vmem:[#allocation2 + $0x38] sm:$0xf] %v1831_v15  ;;  %v1837_v21 = vpack.c.bf16 %v432_v16, %v432_v16  ;;  %v424_v22 = vadd.f32 %v423_v18, %v141_v9  ;;  %v2675_v15 = vld [vmem:[%s2982_s4] ss:$0 sm:$0xff] }
 0x128   :  { %v354_v63 = vadd.f32 %v353_v58, %v2636_v61  ;;  %v544_v58 = vunpack.c.l.bf16 %v2640_v5 }
 0x129   :  { %v355_v3 = vpop.f32.mrf.mxu0  ;;  %530 = vst [vmem:[#allocation2 + $0x5c] sm:$0xf] %v1837_v21  ;;  %v1833_v31 = vpack.c.bf16 %v424_v22, %v424_v22 }
 0x12a   :  { %v2656_v6 = vpack.c.bf16 %v354_v63, %v352_v62  ;;  %v356_v13 = vadd.f32 %v355_v3, %v2634_v60 }
 0x12b   :  { %v357_v10 = vpop.f32.mrf.mxu0  ;;  %526 = vst [vmem:[#allocation2 + $0x44] sm:$0xf] %v1833_v31 }
 0x12c   :  { %v358_v14 = vadd.f32 %v357_v10, %v2636_v61 }
 0x12d   :  { %v361_v17 = vpop.f32.mrf.mxu0 }
 0x12e   :  { %v2660_v20 = vpack.c.bf16 %v358_v14, %v356_v13  ;;  %v362_v25 = vadd.f32 %v361_v17, %v2634_v60  ;;  %v2678_v17 = vld [vmem:[#allocation2 + $0x8] ss:$12 sps:$4 sm:$0xff]  }
 0x12f   :  { %v363_v23 = vpop.f32.mrf.mxu0  ;;  %v546_v21 = vunpack.c.l.bf16 %v2678_v17 }
 0x130   :  { %v364_v28 = vadd.f32 %v363_v23, %v2636_v61 }
 0x131   :  { %v365_v35 = vpop.f32.mrf.mxu0 }
 0x132   :  { %v2664_v43 = vpack.c.bf16 %v364_v28, %v362_v25  ;;  %v366_v56 = vadd.f32 %v365_v35, %v2634_v60 }
 0x133   :  { %v367_v53 = vpop.f32.mrf.mxu0 }
 0x134   :  { %v368_v57 = vadd.f32 %v367_v53, %v2636_v61 }
 0x135   :  { %v742_v59 = vpop.f32.mrf.mxu0 }
 0x136   :  { %v2669_v9 = vpack.c.bf16 %v368_v57, %v366_v56  ;;  %v789_v62 = vadd.f32 %v742_v59, %v544_v58  ;;  %v815_v58 = vunpack.c.l.bf16 %v2644_v11 }
 0x137   :  { %v744_v63 = vpop.f32.mrf.mxu0 }
 0x138   :  { %v1797_v1 = vmul.f32 -1.442695, %v789_v62  ;;  %v783_v7 = vpop.f32.mrf.mxu1  ;;  %v796_v8 = vadd.f32 %v744_v63, %v545_v4 }
 0x139   :  { %v746_v2 = vpop.f32.mrf.mxu0  ;;  %v803_v16 = vadd.f32 %v2675_v15, %v783_v7 }
 0x13a   :  { %2224 = vpow2.f32 %v1797_v1  ;;  %v1973_v10 = vpop.f32.mrf.mxu1  ;;  %v1798_v60 = vmul.f32 -1.442695, %v796_v8 }
 0x13b   :  { %v747_v3 = vpop.f32.mrf.mxu0 }
 0x13c   :  { %v786_v12 = vpop.f32.mrf.mxu1  ;;  %2226 = vpow2.f32 %v1798_v60 }
 0x13d   :  { %v816_v12 = vunpack.c.h.bf16 %v2644_v11 }
 0x13e   :  { %v1974_v13 = vpop.f32.mrf.mxu1 }
 0x147   :  { %v2225_v61 = vpop.eup %2224 }
 0x148   :  { %v793_v14 = vadd.f32 1.0, %v2225_v61 }
 0x149   :  { %v2227_v5 = vpop.eup %2226 }
 0x14a   :  { %2228 = vrcp.f32 %v793_v14  ;;  %v800_v23 = vadd.f32 1.0, %v2227_v5 }
 0x157   :  { %v2229_v18 = vpop.eup %2228 }
 0x158   :  { %v804_v22 = vmul.f32 %v2229_v18, %v803_v16 }
 0x15a   :  { %v805_v25 = vadd.f32 %v804_v22, %v546_v21  ;;  %v817_v21 = vunpack.c.h.bf16 %v2678_v17  ;;  %v926_v17 = vunpack.c.l.bf16 %v2648_v19 }
 0x15c   :  { %2230 = vtanh.f32 %v805_v25 }
 0x15d   :  { %2232 = vrcp.f32 %v800_v23 }
 0x169   :  { %v2231_v28 = vpop.eup %2230 }
 0x16a   :  { %v807_v31 = vsub.f32 0.0, %v2231_v28  ;;  %v2233_v35 = vpop.eup %2232 }
 0x16c   :  { %v808_v53 = vmul.f32 %v2233_v35, %v807_v31 }
 0x16e   :  { %v2681_v56 = vadd.f32 %v2231_v28, %v808_v53 }
 0x170   :  { %v818_v57 = vpack.c.bf16 %v2681_v56, %v2681_v56 }
 0x172   :  { %852 = vmatmul.mubr.bf16.vlgmr.msra.gmra.mxu0 %v818_v57  ;;  %1992 = vmatmul.mubr.bf16.vlgmr.msra.gmra.mxu1 %v818_v57 }
 0x173   :  { %931 = vmatpush1.bf16.msra.mxu0 %v2510_v26  ;;  %1996 = vmatpush3.bf16.msra.mxu1 %v2530_v36 }
 0x174   :  { %932 = vmatprep.subr.bf16.mxu0 %v2513_v27  ;;  %1997 = vmatprep.subr.bf16.mxu1 %v2445_v38 }
 0x175   :  { %962 = vmatprep.mubr.bf16.mxu0 %v2444_v0  ;;  %2011 = vmatprep.mubr.msk.bf16.mxu1 %vm2446_vm0, %v2445_v38 }
 0x177   :  { %933 = vmatpush1.bf16.msra.mxu0 %v2516_v29  ;;  %1998 = vmatpush3.bf16.msra.mxu1 %v2537_v39 }
 0x178   :  { %934 = vmatprep.subr.bf16.mxu0 %v2520_v30  ;;  %1999 = vmatprep.subr.bf16.mxu1 %v2445_v38 }
 0x17b   :  { %935 = vmatpush1.bf16.msra.mxu0 %v2523_v32  ;;  %2000 = vmatpush3.bf16.msra.mxu1 %v2549_v42 }
 0x17c   :  { %936 = vmatprep.subr.bf16.mxu0 %v2526_v33  ;;  %2001 = vmatprep.subr.bf16.mxu1 %v2445_v38 }
 0x17f   :  { %937 = vmatpush1.bf16.msra.mxu0 %v2528_v34  ;;  %2002 = vmatpush3.bf16.msra.mxu1 %v2560_v46 }
 0x180   :  { %938 = vmatprep.subr.bf16.mxu0 %v2532_v37  ;;  %2003 = vmatprep.subr.bf16.mxu1 %v2445_v38 }
 0x183   :  { %939 = vmatpush1.bf16.msra.mxu0 %v2543_v40  ;;  %2004 = vmatpush3.bf16.msra.mxu1 %v2572_v49 }
 0x184   :  { %940 = vmatprep.subr.bf16.mxu0 %v2546_v41  ;;  %2005 = vmatprep.subr.bf16.mxu1 %v2445_v38 }
 0x187   :  { %941 = vmatpush1.bf16.msra.mxu0 %v2553_v44  ;;  %2006 = vmatpush3.bf16.msra.mxu1 %v2581_v51 }
 0x188   :  { %942 = vmatprep.subr.bf16.mxu0 %v2557_v45  ;;  %2007 = vmatprep.subr.bf16.mxu1 %v2445_v38 }
 0x18b   :  { %943 = vmatpush1.bf16.msra.mxu0 %v2566_v47  ;;  %2008 = vmatpush3.bf16.msra.mxu1 %v2587_v52 }
 0x18c   :  { %944 = vmatprep.subr.bf16.mxu0 %v2569_v48  ;;  %2009 = vmatprep.subr.bf16.mxu1 %v2445_v38 }
 0x18f   :  { %945 = vmatpush1.bf16.msra.mxu0 %v2576_v50  ;;  %2010 = vmatpush3.bf16.msra.mxu1 %v2594_v54 }
 0x190   :  { %1041 = vmatprep.subr.bf16.mxu0 %v2508_v24  ;;  %2015 = vmatprep.subr.bf16.mxu1 %v2445_v38 }
 0x232   :  { %v853_v59 = vpop.f32.mrf.mxu0  ;;  %v894_v62 = vpop.f32.mrf.mxu1 }
 0x233   :  { %v900_v63 = vadd.f32 %v853_v59, %v815_v58  ;;  %v914_v5 = vadd.f32 %v2675_v15, %v894_v62 }
 0x234   :  { %v855_v1 = vpop.f32.mrf.mxu0  ;;  %v1993_v2 = vpop.f32.mrf.mxu1 }
 0x235   :  { %v1799_v3 = vmul.f32 -1.442695, %v900_v63  ;;  %v907_v60 = vadd.f32 %v855_v1, %v816_v12 }
 0x236   :  { %v857_v4 = vpop.f32.mrf.mxu0  ;;  %v897_v7 = vpop.f32.mrf.mxu1 }
 0x237   :  { %2234 = vpow2.f32 %v1799_v3  ;;  %v1800_v13 = vmul.f32 -1.442695, %v907_v60 }
 0x238   :  { %v858_v8 = vpop.f32.mrf.mxu0  ;;  %v1994_v10 = vpop.f32.mrf.mxu1 }
 0x239   :  { %2236 = vpow2.f32 %v1800_v13  ;;  %v927_v8 = vunpack.c.h.bf16 %v2648_v19 }
 0x244   :  { %v2235_v61 = vpop.eup %2234 }
 0x245   :  { %v904_v14 = vadd.f32 1.0, %v2235_v61  ;;  %v2766_v61 = vld [vmem:[#allocation2 + $0x20] ss:$12 sps:$4 sm:$0xff]  }
 0x246   :  { %v2237_v16 = vpop.eup %2236 }
 0x247   :  { %2238 = vrcp.f32 %v904_v14  ;;  %v911_v25 = vadd.f32 1.0, %v2237_v16 }
 0x254   :  { %v2239_v18 = vpop.eup %2238 }
 0x255   :  { %v915_v22 = vmul.f32 %v2239_v18, %v914_v5  ;;  %v928_v18 = vunpack.c.l.bf16 %v2766_v61 }
 0x257   :  { %v916_v23 = vadd.f32 %v915_v22, %v817_v21 }
 0x259   :  { %2240 = vtanh.f32 %v916_v23 }
 0x25a   :  { %2242 = vrcp.f32 %v911_v25 }
 0x266   :  { %v2241_v28 = vpop.eup %2240 }
 0x267   :  { %v918_v11 = vsub.f32 %v2681_v56, %v2241_v28  ;;  %v2243_v31 = vpop.eup %2242 }
 0x269   :  { %v919_v35 = vmul.f32 %v2243_v31, %v918_v11 }
 0x26b   :  { %v2725_v53 = vadd.f32 %v2241_v28, %v919_v35 }
 0x26d   :  { %v929_v57 = vpack.c.bf16 %v2725_v53, %v2725_v53 }
 0x26f   :  { %963 = vmatmul.mubr.bf16.vlgmr.msra.gmra.mxu0 %v929_v57  ;;  %2012 = vmatmul.mubr.bf16.vlgmr.msra.gmra.mxu1 %v929_v57 }
 0x270   :  { %1042 = vmatpush1.bf16.msra.mxu0 %v2510_v26  ;;  %2016 = vmatpush3.bf16.msra.mxu1 %v2530_v36 }
 0x271   :  { %1043 = vmatprep.subr.bf16.mxu0 %v2513_v27  ;;  %2017 = vmatprep.subr.bf16.mxu1 %v2445_v38 }
 0x272   :  { %1073 = vmatprep.mubr.bf16.mxu0 %v2444_v0  ;;  %2031 = vmatprep.mubr.msk.bf16.mxu1 %vm2446_vm0, %v2445_v38 }
 0x274   :  { %1044 = vmatpush1.bf16.msra.mxu0 %v2516_v29  ;;  %2018 = vmatpush3.bf16.msra.mxu1 %v2537_v39 }
 0x275   :  { %1045 = vmatprep.subr.bf16.mxu0 %v2520_v30  ;;  %2019 = vmatprep.subr.bf16.mxu1 %v2445_v38 }
 0x278   :  { %1046 = vmatpush1.bf16.msra.mxu0 %v2523_v32  ;;  %2020 = vmatpush3.bf16.msra.mxu1 %v2549_v42 }
 0x279   :  { %1047 = vmatprep.subr.bf16.mxu0 %v2526_v33  ;;  %2021 = vmatprep.subr.bf16.mxu1 %v2445_v38 }
 0x27c   :  { %1048 = vmatpush1.bf16.msra.mxu0 %v2528_v34  ;;  %2022 = vmatpush3.bf16.msra.mxu1 %v2560_v46 }
 0x27d   :  { %1049 = vmatprep.subr.bf16.mxu0 %v2532_v37  ;;  %2023 = vmatprep.subr.bf16.mxu1 %v2445_v38 }
 0x280   :  { %1050 = vmatpush1.bf16.msra.mxu0 %v2543_v40  ;;  %2024 = vmatpush3.bf16.msra.mxu1 %v2572_v49 }
 0x281   :  { %1051 = vmatprep.subr.bf16.mxu0 %v2546_v41  ;;  %2025 = vmatprep.subr.bf16.mxu1 %v2445_v38 }
 0x284   :  { %1052 = vmatpush1.bf16.msra.mxu0 %v2553_v44  ;;  %2026 = vmatpush3.bf16.msra.mxu1 %v2581_v51 }
 0x285   :  { %1053 = vmatprep.subr.bf16.mxu0 %v2557_v45  ;;  %2027 = vmatprep.subr.bf16.mxu1 %v2445_v38 }
 0x288   :  { %1054 = vmatpush1.bf16.msra.mxu0 %v2566_v47  ;;  %2028 = vmatpush3.bf16.msra.mxu1 %v2587_v52 }
 0x289   :  { %1055 = vmatprep.subr.bf16.mxu0 %v2569_v48  ;;  %2029 = vmatprep.subr.bf16.mxu1 %v2445_v38 }
 0x28c   :  { %1056 = vmatpush1.bf16.msra.mxu0 %v2576_v50  ;;  %2030 = vmatpush3.bf16.msra.mxu1 %v2594_v54 }
 0x28d   :  { %1152 = vmatprep.subr.bf16.mxu0 %v2508_v24  ;;  %2035 = vmatprep.subr.bf16.mxu1 %v2445_v38 }
 0x32f   :  { %v964_v56 = vpop.f32.mrf.mxu0  ;;  %v1005_v58 = vpop.f32.mrf.mxu1 }
 0x330   :  { %v1011_v59 = vadd.f32 %v964_v56, %v926_v17  ;;  %v1025_v16 = vadd.f32 %v2675_v15, %v1005_v58 }
 0x331   :  { %v966_v62 = vpop.f32.mrf.mxu0  ;;  %v2013_v63 = vpop.f32.mrf.mxu1 }
 0x332   :  { %v1801_v1 = vmul.f32 -1.442695, %v1011_v59  ;;  %v1018_v10 = vadd.f32 %v966_v62, %v927_v8 }
 0x333   :  { %v968_v2 = vpop.f32.mrf.mxu0  ;;  %v1008_v3 = vpop.f32.mrf.mxu1 }
 0x334   :  { %2244 = vpow2.f32 %v1801_v1  ;;  %v1802_v12 = vmul.f32 -1.442695, %v1018_v10 }
 0x335   :  { %v969_v4 = vpop.f32.mrf.mxu0  ;;  %v2014_v7 = vpop.f32.mrf.mxu1 }
 0x336   :  { %2246 = vpow2.f32 %v1802_v12  ;;  %v1038_v4 = vunpack.c.h.bf16 %v2652_v55 }
 0x341   :  { %v2245_v60 = vpop.eup %2244 }
 0x342   :  { %v1015_v13 = vadd.f32 1.0, %v2245_v60 }
 0x343   :  { %v2247_v14 = vpop.eup %2246 }
 0x344   :  { %2248 = vrcp.f32 %v1015_v13  ;;  %v1022_v23 = vadd.f32 1.0, %v2247_v14  ;;  %v1039_v14 = vunpack.c.h.bf16 %v2766_v61 }
 0x351   :  { %v2249_v5 = vpop.eup %2248 }
 0x352   :  { %v1026_v21 = vmul.f32 %v2249_v5, %v1025_v16 }
 0x354   :  { %v1027_v22 = vadd.f32 %v1026_v21, %v928_v18 }
 0x356   :  { %2250 = vtanh.f32 %v1027_v22 }
 0x357   :  { %2252 = vrcp.f32 %v1022_v23 }
 0x363   :  { %v2251_v19 = vpop.eup %2250 }
 0x364   :  { %v1029_v25 = vsub.f32 %v2725_v53, %v2251_v19  ;;  %v2253_v28 = vpop.eup %2252  ;;  %v1037_v53 = vunpack.c.l.bf16 %v2652_v55 }
 0x366   :  { %v1030_v11 = vmul.f32 %v2253_v28, %v1029_v25 }
 0x368   :  { %v2771_v31 = vadd.f32 %v2251_v19, %v1030_v11  ;;  %v1149_v11 = vunpack.c.h.bf16 %v2656_v6 }
 0x36a   :  { %v1040_v35 = vpack.c.bf16 %v2771_v31, %v2771_v31 }
 0x36c   :  { %1074 = vmatmul.mubr.bf16.vlgmr.msra.gmra.mxu0 %v1040_v35  ;;  %2032 = vmatmul.mubr.bf16.vlgmr.msra.gmra.mxu1 %v1040_v35 }
 0x36d   :  { %1153 = vmatpush1.bf16.msra.mxu0 %v2510_v26  ;;  %2036 = vmatpush3.bf16.msra.mxu1 %v2530_v36 }
 0x36e   :  { %1154 = vmatprep.subr.bf16.mxu0 %v2513_v27  ;;  %2037 = vmatprep.subr.bf16.mxu1 %v2445_v38 }
 0x36f   :  { %1184 = vmatprep.mubr.bf16.mxu0 %v2444_v0  ;;  %2051 = vmatprep.mubr.msk.bf16.mxu1 %vm2446_vm0, %v2445_v38 }
 0x371   :  { %1155 = vmatpush1.bf16.msra.mxu0 %v2516_v29  ;;  %2038 = vmatpush3.bf16.msra.mxu1 %v2537_v39 }
 0x372   :  { %1156 = vmatprep.subr.bf16.mxu0 %v2520_v30  ;;  %2039 = vmatprep.subr.bf16.mxu1 %v2445_v38 }
 0x375   :  { %1157 = vmatpush1.bf16.msra.mxu0 %v2523_v32  ;;  %2040 = vmatpush3.bf16.msra.mxu1 %v2549_v42 }
 0x376   :  { %1158 = vmatprep.subr.bf16.mxu0 %v2526_v33  ;;  %2041 = vmatprep.subr.bf16.mxu1 %v2445_v38 }
 0x379   :  { %1159 = vmatpush1.bf16.msra.mxu0 %v2528_v34  ;;  %2042 = vmatpush3.bf16.msra.mxu1 %v2560_v46 }
 0x37a   :  { %1160 = vmatprep.subr.bf16.mxu0 %v2532_v37  ;;  %2043 = vmatprep.subr.bf16.mxu1 %v2445_v38 }
 0x37d   :  { %1161 = vmatpush1.bf16.msra.mxu0 %v2543_v40  ;;  %2044 = vmatpush3.bf16.msra.mxu1 %v2572_v49 }
 0x37e   :  { %1162 = vmatprep.subr.bf16.mxu0 %v2546_v41  ;;  %2045 = vmatprep.subr.bf16.mxu1 %v2445_v38 }
 0x381   :  { %1163 = vmatpush1.bf16.msra.mxu0 %v2553_v44  ;;  %2046 = vmatpush3.bf16.msra.mxu1 %v2581_v51 }
 0x382   :  { %1164 = vmatprep.subr.bf16.mxu0 %v2557_v45  ;;  %2047 = vmatprep.subr.bf16.mxu1 %v2445_v38 }
 0x385   :  { %1165 = vmatpush1.bf16.msra.mxu0 %v2566_v47  ;;  %2048 = vmatpush3.bf16.msra.mxu1 %v2587_v52 }
 0x386   :  { %1166 = vmatprep.subr.bf16.mxu0 %v2569_v48  ;;  %2049 = vmatprep.subr.bf16.mxu1 %v2445_v38 }
 0x389   :  { %1167 = vmatpush1.bf16.msra.mxu0 %v2576_v50  ;;  %2050 = vmatpush3.bf16.msra.mxu1 %v2594_v54 }
 0x38a   :  { %1263 = vmatprep.subr.bf16.mxu0 %v2508_v24  ;;  %2055 = vmatprep.subr.bf16.mxu1 %v2445_v38 }
 0x42c   :  { %v1075_v57 = vpop.f32.mrf.mxu0  ;;  %v1116_v17 = vpop.f32.mrf.mxu1 }
 0x42d   :  { %v1122_v56 = vadd.f32 %v1075_v57, %v1037_v53  ;;  %v1136_v60 = vadd.f32 %v2675_v15, %v1116_v17  ;;  %v2858_v17 = vld [vmem:[#allocation2 + $0x38] ss:$12 sps:$4 sm:$0xff]  }
 0x42e   :  { %v1077_v58 = vpop.f32.mrf.mxu0  ;;  %v2033_v59 = vpop.f32.mrf.mxu1 }
 0x42f   :  { %v1803_v62 = vmul.f32 -1.442695, %v1122_v56  ;;  %v1129_v7 = vadd.f32 %v1077_v58, %v1038_v4 }
 0x430   :  { %v1079_v63 = vpop.f32.mrf.mxu0  ;;  %v1119_v1 = vpop.f32.mrf.mxu1 }
 0x431   :  { %2254 = vpow2.f32 %v1803_v62  ;;  %v1804_v8 = vmul.f32 -1.442695, %v1129_v7  ;;  %v1150_v62 = vunpack.c.l.bf16 %v2858_v17 }
 0x432   :  { %v1080_v2 = vpop.f32.mrf.mxu0  ;;  %v2034_v3 = vpop.f32.mrf.mxu1 }
 0x433   :  { %2256 = vpow2.f32 %v1804_v8 }
 0x43e   :  { %v2255_v24 = vpop.eup %2254 }
 0x43f   :  { %v1126_v10 = vadd.f32 1.0, %v2255_v24 }
 0x440   :  { %v2257_v12 = vpop.eup %2256 }
 0x441   :  { %2258 = vrcp.f32 %v1126_v10  ;;  %v1133_v18 = vadd.f32 1.0, %v2257_v12  ;;  %v2867_v10 = vld [vmem:[#allocation9 + $0xa8] ss:$12 sps:$4 sm:$0xff]   ;;  %v2870_v12 = vld [vmem:[#allocation9 + $0xb0] ss:$12 sps:$4 sm:$0xff]  }
 0x44e   :  { %v2259_v13 = vpop.eup %2258 }
 0x44f   :  { %v1137_v16 = vmul.f32 %v2259_v13, %v1136_v60  ;;  %v2873_v60 = vld [vmem:[#allocation9 + $0x94] ss:$12 sps:$4 sm:$0xff]   ;;  %v2880_v13 = vld [vmem:[#allocation9 + $0x90] ss:$12 sps:$4 sm:$0xff]  }
 0x451   :  { %v1138_v5 = vadd.f32 %v1137_v16, %v1039_v14  ;;  %v2883_v14 = vld [vmem:[#allocation9 + $0x98] ss:$12 sps:$4 sm:$0xff]   ;;  %v2886_v16 = vld [vmem:[#allocation9 + $0x7c] ss:$12 sps:$4 sm:$0xff]  }
 0x453   :  { %2260 = vtanh.f32 %v1138_v5  ;;  %v2890_v5 = vld [vmem:[#allocation9 + $0x78] ss:$12 sps:$4 sm:$0xff]  }
 0x454   :  { %2262 = vrcp.f32 %v1133_v18  ;;  %v2894_v18 = vld [vmem:[#allocation9 + $0x64] ss:$12 sps:$4 sm:$0xff]  }
 0x460   :  { %v2261_v21 = vpop.eup %2260 }
 0x461   :  { %v1140_v55 = vsub.f32 %v2771_v31, %v2261_v21  ;;  %v2263_v22 = vpop.eup %2262 }
 0x463   :  { %v1141_v23 = vmul.f32 %v2263_v22, %v1140_v55  ;;  %v2902_v55 = vld [vmem:[#allocation9 + $0x4c] ss:$12 sps:$4 sm:$0xff]  }
 0x465   :  { %v2815_v19 = vadd.f32 %v2261_v21, %v1141_v23  ;;  %v2898_v21 = vld [vmem:[#allocation9 + $0x60] ss:$12 sps:$4 sm:$0xff]  }
 0x467   :  { %v1151_v25 = vpack.c.bf16 %v2815_v19, %v2815_v19 }
 0x469   :  { %1185 = vmatmul.mubr.bf16.vlgmr.msra.gmra.mxu0 %v1151_v25  ;;  %2052 = vmatmul.mubr.bf16.vlgmr.msra.gmra.mxu1 %v1151_v25 }
 0x46a   :  { %1264 = vmatpush1.bf16.msra.mxu0 %v2510_v26  ;;  %2056 = vmatpush3.bf16.msra.mxu1 %v2530_v36  ;;  %v2852_v26 = vld [vmem:[#allocation9 + $0xac] ss:$12 sps:$4 sm:$0xff]  }
 0x46b   :  { %1265 = vmatprep.subr.bf16.mxu0 %v2513_v27  ;;  %2057 = vmatprep.subr.bf16.mxu1 %v2445_v38  ;;  %v1148_v27 = vunpack.c.l.bf16 %v2656_v6 }
 0x46c   :  { %1295 = vmatprep.mubr.bf16.mxu0 %v2444_v0  ;;  %2071 = vmatprep.mubr.msk.bf16.mxu1 %vm2446_vm0, %v2445_v38 }
 0x46e   :  { %1266 = vmatpush1.bf16.msra.mxu0 %v2516_v29  ;;  %2058 = vmatpush3.bf16.msra.mxu1 %v2537_v39 }
 0x46f   :  { %1267 = vmatprep.subr.bf16.mxu0 %v2520_v30  ;;  %2059 = vmatprep.subr.bf16.mxu1 %v2445_v38 }
 0x472   :  { %1268 = vmatpush1.bf16.msra.mxu0 %v2523_v32  ;;  %2060 = vmatpush3.bf16.msra.mxu1 %v2549_v42 }
 0x473   :  { %1269 = vmatprep.subr.bf16.mxu0 %v2526_v33  ;;  %2061 = vmatprep.subr.bf16.mxu1 %v2445_v38 }
 0x476   :  { %1270 = vmatpush1.bf16.msra.mxu0 %v2528_v34  ;;  %2062 = vmatpush3.bf16.msra.mxu1 %v2560_v46 }
 0x477   :  { %1271 = vmatprep.subr.bf16.mxu0 %v2532_v37  ;;  %2063 = vmatprep.subr.bf16.mxu1 %v2445_v38 }
 0x47a   :  { %1272 = vmatpush1.bf16.msra.mxu0 %v2543_v40  ;;  %2064 = vmatpush3.bf16.msra.mxu1 %v2572_v49 }
 0x47b   :  { %1273 = vmatprep.subr.bf16.mxu0 %v2546_v41  ;;  %2065 = vmatprep.subr.bf16.mxu1 %v2445_v38 }
 0x47e   :  { %1274 = vmatpush1.bf16.msra.mxu0 %v2553_v44  ;;  %2066 = vmatpush3.bf16.msra.mxu1 %v2581_v51 }
 0x47f   :  { %1275 = vmatprep.subr.bf16.mxu0 %v2557_v45  ;;  %2067 = vmatprep.subr.bf16.mxu1 %v2445_v38 }
 0x482   :  { %1276 = vmatpush1.bf16.msra.mxu0 %v2566_v47  ;;  %2068 = vmatpush3.bf16.msra.mxu1 %v2587_v52 }
 0x483   :  { %1277 = vmatprep.subr.bf16.mxu0 %v2569_v48  ;;  %2069 = vmatprep.subr.bf16.mxu1 %v2445_v38 }
 0x486   :  { %1278 = vmatpush1.bf16.msra.mxu0 %v2576_v50  ;;  %2070 = vmatpush3.bf16.msra.mxu1 %v2594_v54 }
 0x487   :  { %1374 = vmatprep.subr.bf16.mxu0 %v2852_v26  ;;  %2075 = vmatprep.subr.bf16.mxu1 %v2445_v38 }
 0x529   :  { %v1186_v29 = vpop.f32.mrf.mxu0  ;;  %v1227_v30 = vpop.f32.mrf.mxu1 }
 0x52a   :  { %v1233_v32 = vadd.f32 %v1186_v29, %v1148_v27  ;;  %v1247_v58 = vadd.f32 %v2675_v15, %v1227_v30  ;;  %v1261_v29 = vunpack.c.h.bf16 %v2858_v17  ;;  %v2322_v17 = vld [vmem:[#allocation9 + $0x1c] ss:$12 sps:$4 sm:$0xff]  }
 0x52b   :  { %v1188_v33 = vpop.f32.mrf.mxu0  ;;  %v2053_v34 = vpop.f32.mrf.mxu1 }
 0x52c   :  { %v1805_v36 = vmul.f32 -1.442695, %v1233_v32  ;;  %v1240_v31 = vadd.f32 %v1188_v33, %v1149_v11  ;;  %v2317_v11 = vld [vmem:[#allocation9 + $0x48] ss:$12 sps:$4 sm:$0xff]  }
 0x52d   :  { %v1190_v37 = vpop.f32.mrf.mxu0  ;;  %v1230_v39 = vpop.f32.mrf.mxu1 }
 0x52e   :  { %2264 = vpow2.f32 %v1805_v36  ;;  %v1806_v35 = vmul.f32 -1.442695, %v1240_v31  ;;  %v2318_v31 = vld [vmem:[#allocation9 + $0x50] ss:$12 sps:$4 sm:$0xff]  }
 0x52f   :  { %v1191_v61 = vpop.f32.mrf.mxu0  ;;  %v2054_v28 = vpop.f32.mrf.mxu1 }
 0x530   :  { %2266 = vpow2.f32 %v1806_v35  ;;  %v2315_v28 = vld [vmem:[#allocation9 + $0x80] ss:$12 sps:$4 sm:$0xff]  }
 0x531   :  { %v2319_v35 = vld [vmem:[#allocation9 + $0x34] ss:$12 sps:$4 sm:$0xff]  }
 0x53b   :  { %v2265_v53 = vpop.eup %2264 }
 0x53c   :  { %v1237_v57 = vadd.f32 1.0, %v2265_v53  ;;  %v2320_v53 = vld [vmem:[#allocation9 + $0x30] ss:$12 sps:$4 sm:$0xff]  }
 0x53d   :  { %v2267_v56 = vpop.eup %2266 }
 0x53e   :  { %2268 = vrcp.f32 %v1237_v57  ;;  %v1244_v2 = vadd.f32 1.0, %v2267_v56  ;;  %v2321_v57 = vld [vmem:[#allocation9 + $0x38] ss:$12 sps:$4 sm:$0xff]  }
 0x53f   :  { %v2323_v56 = vld [vmem:[#allocation9 + $0x18] ss:$12 sps:$4 sm:$0xff]  }
 0x54b   :  { %v2269_v59 = vpop.eup %2268 }
 0x54c   :  { %v1248_v63 = vmul.f32 %v2269_v59, %v1247_v58  ;;  %v2324_v58 = vld [vmem:[#allocation9 + $0x20] ss:$12 sps:$4 sm:$0xff]   ;;  %v2325_v59 = vld [vmem:[#allocation9 + $0x4] ss:$12 sps:$4 sm:$0xff]  }
 0x54e   :  { %v1249_v1 = vadd.f32 %v1248_v63, %v1150_v62  ;;  %v2326_v62 = vld [vmem:[#allocation9] ss:$12 sps:$4 sm:$0xff]   ;;  %v2327_v63 = vld [vmem:[#allocation9 + $0x8] ss:$12 sps:$4 sm:$0xff]  }
 0x550   :  { %2270 = vtanh.f32 %v1249_v1  ;;  %v1370_v1 = vunpack.c.l.bf16 %v2664_v43 }
 0x551   :  { %2272 = vrcp.f32 %v1244_v2 }
 0x55d   :  { %v2271_v6 = vpop.eup %2270 }
 0x55e   :  { %v1251_v3 = vsub.f32 %v2815_v19, %v2271_v6  ;;  %v2273_v4 = vpop.eup %2272 }
 0x560   :  { %v1252_v7 = vmul.f32 %v2273_v4, %v1251_v3 }
 0x562   :  { %v2863_v8 = vadd.f32 %v2271_v6, %v1252_v7 }
 0x564   :  { %v1262_v24 = vpack.c.bf16 %v2863_v8, %v2863_v8 }
 0x566   :  { %1296 = vmatmul.mubr.bf16.vlgmr.msra.gmra.mxu0 %v1262_v24  ;;  %2072 = vmatmul.mubr.bf16.vlgmr.msra.gmra.mxu1 %v1262_v24 }
 0x567   :  { %1375 = vmatpush1.bf16.msra.mxu0 %v2867_v10  ;;  %2076 = vmatpush3.bf16.msra.mxu1 %v2870_v12 }
 0x568   :  { %1376 = vmatprep.subr.bf16.mxu0 %v2873_v60  ;;  %2077 = vmatprep.subr.bf16.mxu1 %v2445_v38 }
 0x569   :  { %1406 = vmatprep.mubr.bf16.mxu0 %v2444_v0  ;;  %2091 = vmatprep.mubr.msk.bf16.mxu1 %vm2446_vm0, %v2445_v38 }
 0x56b   :  { %1377 = vmatpush1.bf16.msra.mxu0 %v2880_v13  ;;  %2078 = vmatpush3.bf16.msra.mxu1 %v2883_v14 }
 0x56c   :  { %1378 = vmatprep.subr.bf16.mxu0 %v2886_v16  ;;  %2079 = vmatprep.subr.bf16.mxu1 %v2445_v38 }
 0x56f   :  { %1379 = vmatpush1.bf16.msra.mxu0 %v2890_v5  ;;  %2080 = vmatpush3.bf16.msra.mxu1 %v2549_v42 }
 0x570   :  { %1380 = vmatprep.subr.bf16.mxu0 %v2894_v18  ;;  %2081 = vmatprep.subr.bf16.mxu1 %v2445_v38 }
 0x573   :  { %1381 = vmatpush1.bf16.msra.mxu0 %v2898_v21  ;;  %2082 = vmatpush3.bf16.msra.mxu1 %v2560_v46 }
 0x574   :  { %1382 = vmatprep.subr.bf16.mxu0 %v2902_v55  ;;  %2083 = vmatprep.subr.bf16.mxu1 %v2445_v38 }
 0x577   :  { %1383 = vmatpush1.bf16.msra.mxu0 %v2543_v40  ;;  %2084 = vmatpush3.bf16.msra.mxu1 %v2572_v49  ;;  %v1259_v40 = vunpack.c.l.bf16 %v2660_v20 }
 0x578   :  { %1384 = vmatprep.subr.bf16.mxu0 %v2546_v41  ;;  %2085 = vmatprep.subr.bf16.mxu1 %v2445_v38 }
 0x57b   :  { %1385 = vmatpush1.bf16.msra.mxu0 %v2553_v44  ;;  %2086 = vmatpush3.bf16.msra.mxu1 %v2581_v51 }
 0x57c   :  { %1386 = vmatprep.subr.bf16.mxu0 %v2557_v45  ;;  %2087 = vmatprep.subr.bf16.mxu1 %v2445_v38 }
 0x57f   :  { %1387 = vmatpush1.bf16.msra.mxu0 %v2566_v47  ;;  %2088 = vmatpush3.bf16.msra.mxu1 %v2587_v52 }
 0x580   :  { %1388 = vmatprep.subr.bf16.mxu0 %v2569_v48  ;;  %2089 = vmatprep.subr.bf16.mxu1 %v2445_v38 }
 0x583   :  { %1389 = vmatpush1.bf16.msra.mxu0 %v2576_v50  ;;  %2090 = vmatpush3.bf16.msra.mxu1 %v2594_v54  ;;  %v1260_v50 = vunpack.c.h.bf16 %v2660_v20 }
 0x584   :  { %1485 = vmatprep.subr.bf16.mxu0 %v2852_v26  ;;  %2095 = vmatprep.subr.bf16.mxu1 %v2445_v38 }
 0x626   :  { %v1297_v41 = vpop.f32.mrf.mxu0  ;;  %v1338_v42 = vpop.f32.mrf.mxu1 }
 0x627   :  { %v1344_v44 = vadd.f32 %v1297_v41, %v1259_v40  ;;  %v1358_v26 = vadd.f32 %v2675_v15, %v1338_v42 }
 0x628   :  { %v1299_v45 = vpop.f32.mrf.mxu0  ;;  %v2073_v46 = vpop.f32.mrf.mxu1 }
 0x629   :  { %v1807_v47 = vmul.f32 -1.442695, %v1344_v44  ;;  %v1351_v54 = vadd.f32 %v1299_v45, %v1260_v50  ;;  %v2216_v50 = vld [vmem:[#allocation10 + $0x38] sm:$0xff]  }
 0x62a   :  { %v1301_v49 = vpop.f32.mrf.mxu0  ;;  %v1341_v48 = vpop.f32.mrf.mxu1 }
 0x62b   :  { %2274 = vpow2.f32 %v1807_v47  ;;  %v1808_v22 = vmul.f32 -1.442695, %v1351_v54  ;;  %v2217_v54 = vld [vmem:[#allocation10 + $0x30] sm:$0xff]  }
 0x62c   :  { %v1302_v51 = vpop.f32.mrf.mxu0  ;;  %v2074_v52 = vpop.f32.mrf.mxu1 }
 0x62d   :  { %2276 = vpow2.f32 %v1808_v22  ;;  %v2218_v22 = vld [vmem:[#allocation10 + $0x28] sm:$0xff]  }
 0x638   :  { %v2275_v23 = vpop.eup %2274 }
 0x639   :  { %v1348_v19 = vadd.f32 1.0, %v2275_v23  ;;  %v2219_v23 = vld [vmem:[#allocation10 + $0x20] sm:$0xff]  }
 0x63a   :  { %v2277_v25 = vpop.eup %2276 }
 0x63b   :  { %2278 = vrcp.f32 %v1348_v19  ;;  %v1355_v33 = vadd.f32 1.0, %v2277_v25  ;;  %v2220_v19 = vld [vmem:[#allocation10 + $0x18] sm:$0xff]   ;;  %v2221_v25 = vld [vmem:[#allocation10 + $0x10] sm:$0xff]  }
 0x648   :  { %v2279_v27 = vpop.eup %2278 }
 0x649   :  { %v1359_v30 = vmul.f32 %v2279_v27, %v1358_v26  ;;  %v2222_v26 = vld [vmem:[#allocation10 + $0x8] sm:$0xff]   ;;  %v2223_v27 = vld [vmem:[#allocation10] sm:$0xff]  }
 0x64b   :  { %v1360_v32 = vadd.f32 %v1359_v30, %v1261_v29  ;;  %v1481_v29 = vunpack.c.l.bf16 %v2669_v9 }
 0x64d   :  { %2280 = vtanh.f32 %v1360_v32 }
 0x64e   :  { %2282 = vrcp.f32 %v1355_v33 }
 0x65a   :  { %v2281_v34 = vpop.eup %2280 }
 0x65b   :  { %v1362_v20 = vsub.f32 %v2863_v8, %v2281_v34  ;;  %v2283_v36 = vpop.eup %2282 }
 0x65d   :  { %v1363_v37 = vmul.f32 %v2283_v36, %v1362_v20 }
 0x65f   :  { %v2927_v39 = vadd.f32 %v2281_v34, %v1363_v37 }
 0x661   :  { %v1373_v61 = vpack.c.bf16 %v2927_v39, %v2927_v39 }
 0x663   :  { %1407 = vmatmul.mubr.bf16.vlgmr.msra.gmra.mxu0 %v1373_v61  ;;  %2092 = vmatmul.mubr.bf16.vlgmr.msra.gmra.mxu1 %v1373_v61 }
 0x664   :  { %1486 = vmatpush1.bf16.msra.mxu0 %v2867_v10  ;;  %2096 = vmatpush3.bf16.msra.mxu1 %v2870_v12 }
 0x665   :  { %1487 = vmatprep.subr.bf16.mxu0 %v2873_v60  ;;  %2097 = vmatprep.subr.bf16.mxu1 %v2445_v38 }
 0x666   :  { %1517 = vmatprep.mubr.bf16.mxu0 %v2444_v0  ;;  %2111 = vmatprep.mubr.msk.bf16.mxu1 %vm2446_vm0, %v2445_v38  ;;  %v2316_v0 = vld [vmem:[#allocation9 + $0x68] ss:$12 sps:$4 sm:$0xff]  }
 0x668   :  { %1488 = vmatpush1.bf16.msra.mxu0 %v2880_v13  ;;  %2098 = vmatpush3.bf16.msra.mxu1 %v2883_v14  ;;  %v1371_v13 = vunpack.c.h.bf16 %v2664_v43 }
 0x669   :  { %1489 = vmatprep.subr.bf16.mxu0 %v2886_v16  ;;  %2099 = vmatprep.subr.bf16.mxu1 %v2445_v38 }
 0x66c   :  { %1490 = vmatpush1.bf16.msra.mxu0 %v2890_v5  ;;  %2100 = vmatpush3.bf16.msra.mxu1 %v2315_v28 }
 0x66d   :  { %1491 = vmatprep.subr.bf16.mxu0 %v2894_v18  ;;  %2101 = vmatprep.subr.bf16.mxu1 %v2445_v38 }
 0x670   :  { %1492 = vmatpush1.bf16.msra.mxu0 %v2898_v21  ;;  %2102 = vmatpush3.bf16.msra.mxu1 %v2316_v0  ;;  %v2954_v21 = vld [vmem:[#allocation2 + $0x50] ss:$12 sps:$4 sm:$0xff]   ;;  %v1482_v0 = vunpack.c.h.bf16 %v2669_v9 }
 0x671   :  { %1493 = vmatprep.subr.bf16.mxu0 %v2902_v55  ;;  %2103 = vmatprep.subr.bf16.mxu1 %v2445_v38  ;;  %v1372_v42 = vunpack.c.l.bf16 %v2954_v21 }
 0x674   :  { %1494 = vmatpush1.bf16.msra.mxu0 %v2317_v11  ;;  %2104 = vmatpush3.bf16.msra.mxu1 %v2318_v31 }
 0x675   :  { %1495 = vmatprep.subr.bf16.mxu0 %v2319_v35  ;;  %2105 = vmatprep.subr.bf16.mxu1 %v2445_v38 }
 0x678   :  { %1496 = vmatpush1.bf16.msra.mxu0 %v2320_v53  ;;  %2106 = vmatpush3.bf16.msra.mxu1 %v2321_v57 }
 0x679   :  { %1497 = vmatprep.subr.bf16.mxu0 %v2322_v17  ;;  %2107 = vmatprep.subr.bf16.mxu1 %v2445_v38 }
 0x67c   :  { %1498 = vmatpush1.bf16.msra.mxu0 %v2323_v56  ;;  %2108 = vmatpush3.bf16.msra.mxu1 %v2324_v58  ;;  %v1483_v56 = vunpack.c.h.bf16 %v2954_v21 }
 0x67d   :  { %1499 = vmatprep.subr.bf16.mxu0 %v2325_v59  ;;  %2109 = vmatprep.subr.bf16.mxu1 %v2445_v38 }
 0x680   :  { %1500 = vmatpush1.bf16.msra.mxu0 %v2326_v62  ;;  %2110 = vmatpush3.bf16.msra.mxu1 %v2327_v63 }
 0x681   :  { %2115 = vmatprep.subr.bf16.mxu0 %v2445_v38 }
 0x723   :  { %v1408_v2 = vpop.f32.mrf.mxu0  ;;  %v1449_v6 = vpop.f32.mrf.mxu1 }
 0x724   :  { %v1455_v3 = vadd.f32 %v1408_v2, %v1370_v1  ;;  %v1469_v40 = vadd.f32 %v2675_v15, %v1449_v6 }
 0x725   :  { %v1410_v4 = vpop.f32.mrf.mxu0  ;;  %v2093_v7 = vpop.f32.mrf.mxu1 }
 0x726   :  { %v1809_v8 = vmul.f32 -1.442695, %v1455_v3  ;;  %v1462_v14 = vadd.f32 %v1410_v4, %v1371_v13  ;;  %v1813_v4 = vld [vmem:[%s2984_s6] ss:$0 sm:$0xff] }
 0x727   :  { %v1412_v24 = vpop.f32.mrf.mxu0  ;;  %v1452_v10 = vpop.f32.mrf.mxu1 }
 0x728   :  { %2284 = vpow2.f32 %v1809_v8  ;;  %v1810_v16 = vmul.f32 -1.442695, %v1462_v14 }
 0x729   :  { %v1413_v12 = vpop.f32.mrf.mxu0  ;;  %v2094_v60 = vpop.f32.mrf.mxu1 }
 0x72a   :  { %2286 = vpow2.f32 %v1810_v16 }
 0x735   :  { %v2285_v5 = vpop.eup %2284 }
 0x736   :  { %v1459_v18 = vadd.f32 1.0, %v2285_v5 }
 0x737   :  { %v2287_v55 = vpop.eup %2286 }
 0x738   :  { %2288 = vrcp.f32 %v1459_v18  ;;  %v1466_v46 = vadd.f32 1.0, %v2287_v55 }
 0x745   :  { %v2289_v41 = vpop.eup %2288 }
 0x746   :  { %v1470_v44 = vmul.f32 %v2289_v41, %v1469_v40 }
 0x748   :  { %v1471_v45 = vadd.f32 %v1470_v44, %v1372_v42 }
 0x74a   :  { %2290 = vtanh.f32 %v1471_v45 }
 0x74b   :  { %2292 = vrcp.f32 %v1466_v46 }
 0x757   :  { %v2291_v43 = vpop.eup %2290 }
 0x758   :  { %v1473_v47 = vsub.f32 %v2927_v39, %v2291_v43  ;;  %v2293_v49 = vpop.eup %2292 }
 0x75a   :  { %v1474_v48 = vmul.f32 %v2293_v49, %v1473_v47 }
 0x75c   :  { %v1475_v51 = vadd.f32 %v2291_v43, %v1474_v48 }
 0x75e   :  { %v1484_v52 = vpack.c.bf16 %v1475_v51, %v1475_v51 }
 0x760   :  { %1518 = vmatmul.mubr.bf16.vlgmr.msra.gmra.mxu0 %v1484_v52  ;;  %2112 = vmatmul.mubr.bf16.vlgmr.msra.gmra.mxu1 %v1484_v52 }
 0x761   :  { %2131 = vmatprep.mubr.msk.bf16.mxu0 %vm2446_vm0, %v2445_v38  ;;  %2116 = vmatpush3.bf16.msra.mxu0 %v2216_v50 }
 0x762   :  { %2117 = vmatprep.subr.bf16.mxu0 %v2445_v38 }
 0x765   :  { %2118 = vmatpush3.bf16.msra.mxu0 %v2217_v54 }
 0x766   :  { %2119 = vmatprep.subr.bf16.mxu0 %v2445_v38 }
 0x769   :  { %2120 = vmatpush3.bf16.msra.mxu0 %v2218_v22 }
 0x76a   :  { %2121 = vmatprep.subr.bf16.mxu0 %v2445_v38 }
 0x76d   :  { %2122 = vmatpush3.bf16.msra.mxu0 %v2219_v23 }
 0x76e   :  { %2123 = vmatprep.subr.bf16.mxu0 %v2445_v38 }
 0x771   :  { %2124 = vmatpush3.bf16.msra.mxu0 %v2220_v19 }
 0x772   :  { %2125 = vmatprep.subr.bf16.mxu0 %v2445_v38 }
 0x775   :  { %2126 = vmatpush3.bf16.msra.mxu0 %v2221_v25 }
 0x776   :  { %2127 = vmatprep.subr.bf16.mxu0 %v2445_v38 }
 0x779   :  { %2128 = vmatpush3.bf16.msra.mxu0 %v2222_v26 }
 0x77a   :  { %2129 = vmatprep.subr.bf16.mxu0 %v2445_v38 }
 0x77d   :  { %2130 = vmatpush3.bf16.msra.mxu0 %v2223_v27 }
 0x820   :  { %v1519_v30 = vpop.f32.mrf.mxu0  ;;  %v1560_v32 = vpop.f32.mrf.mxu1 }
 0x821   :  { %v1566_v33 = vadd.f32 %v1519_v30, %v1481_v29  ;;  %v1580_v57 = vadd.f32 %v2675_v15, %v1560_v32 }
 0x822   :  { %v1521_v34 = vpop.f32.mrf.mxu0  ;;  %v2113_v20 = vpop.f32.mrf.mxu1 }
 0x823   :  { %v1811_v36 = vmul.f32 -1.442695, %v1566_v33  ;;  %v1573_v11 = vadd.f32 %v1521_v34, %v1482_v0 }
 0x824   :  { %v1523_v37 = vpop.f32.mrf.mxu0  ;;  %v1563_v39 = vpop.f32.mrf.mxu1 }
 0x825   :  { %2294 = vpow2.f32 %v1811_v36  ;;  %v1812_v31 = vmul.f32 -1.442695, %v1573_v11 }
 0x826   :  { %v1524_v61 = vpop.f32.mrf.mxu0  ;;  %v2114_v28 = vpop.f32.mrf.mxu1 }
 0x827   :  { %2296 = vpow2.f32 %v1812_v31 }
 0x832   :  { %v2295_v35 = vpop.eup %2294 }
 0x833   :  { %v1570_v38 = vadd.f32 1.0, %v2295_v35 }
 0x834   :  { %v2297_v53 = vpop.eup %2296 }
 0x835   :  { %2298 = vrcp.f32 %v1570_v38  ;;  %v1577_v62 = vadd.f32 1.0, %v2297_v53 }
 0x842   :  { %v2299_v17 = vpop.eup %2298 }
 0x843   :  { %v1581_v58 = vmul.f32 %v2299_v17, %v1580_v57 }
 0x845   :  { %v1582_v59 = vadd.f32 %v1581_v58, %v1483_v56 }
 0x847   :  { %2300 = vtanh.f32 %v1582_v59 }
 0x848   :  { %2302 = vrcp.f32 %v1577_v62 }
 0x854   :  { %v2301_v63 = vpop.eup %2300 }
 0x855   :  { %v1584_v1 = vsub.f32 %v1475_v51, %v2301_v63  ;;  %v2303_v9 = vpop.eup %2302 }
 0x857   :  { %v1585_v2 = vmul.f32 %v2303_v9, %v1584_v1 }
 0x859   :  { %v1586_v6 = vadd.f32 %v2301_v63, %v1585_v2 }
 0x85b   :  { %v1591_v3 = vpack.c.bf16 %v1586_v6, %v1586_v6 }
 0x85d   :  { %2132 = vmatmul.mubr.bf16.vlgmr.msra.gmra.mxu0 %v1591_v3 }
 0x91d   :  { %v1697_v15 = vpop.f32.mrf.mxu0 }
 0x91e   :  { %v1698_v7 = vadd.f32 %v1813_v4, %v1697_v15 }
 0x91f   :  { %v2133_v8 = vpop.f32.mrf.mxu0 }
 0x920   :  { %1703 = vst [vmem:[#allocation12] sm:$0xff] %v1698_v7 }
 0x921   :  { %v1700_v24 = vpop.f32.mrf.mxu0 }
 0x922   :  { %2419 = shalt.err (!%p2416_p10)
}
 0x923   :  { %1713 = dma.vmem_to_hbm [thread:$0]  %s1711_s26, 128, %s2985_s7, [#allocation6]   ;;  %v2134_v10 = vpop.f32.mrf.mxu0 }
 0x924   :  { %2434 = dma.done.wait [#allocation6], 128  }
 0x925   :  { %2435 = vsyncadd [#allocation6], 4294967168 }
 0x926   :  { %1717 = vsyncpa [#allocation5], 1 }
 0x927   :  { %1718 = vsyncpa [#allocation8], 1 }
 0x928   :  { %1719 = vsyncpa [#allocation11], 1 }
 0x929   :  { %1720 = vsyncpa [#allocation6], 1 }

</bundles_post_ra>
